<compile_context>
chip_gen: v5e
topology: v5e:2x2
jax: 0.10.0
libtpu: 0.0.40
codegen_flags: <defaults>
</compile_context>

<pallas_src>
import jax
import jax.numpy as jnp
from jax import lax
from jax.experimental import pallas as pl
from jax.experimental.pallas import tpu as pltpu  # noqa: F401  (TPU backend)

BN_EPS = 1e-5


# ----------------------------------------------------------------------------
# Single fused kernel: layout-convert + conv1 + BN1 + ReLU + conv2 + BN2 +
# ReLU + 2x2 max-pool.  Everything lives in VMEM; no grid, no scratch.
# ----------------------------------------------------------------------------
def encoder_kernel(x_ref, e_ref, r_ref, b1_ref, b2_ref, t_ref,
                   gev_ref, god_ref, rev_ref, rod_ref,
                   g1_ref, beta1_ref, g2_ref, beta2_ref, o_ref):
    N, Cin, H, W = x_ref.shape
    f32 = jnp.float32
    inv_count = 1.0 / float(N * H * W)          # BN reduces over (N, H, W)
    wc = b1_ref.shape[-1]                       # W * Cout (lane-dense: 128 here)

    def conv(a, band_ref):
        """3x3 SAME conv in lane-packed layout: a (H, W*Ci) -> (H, W*Co)."""
        # dy = 1 (no vertical shift); dy = 0 / 2 via exact 0/1 row-selection
        # matmuls (zero rows at the boundary) - no slicing / rolling / masking.
        acc = jnp.dot(a, band_ref[1], preferred_element_type=f32)
        for dy in (0, 2):
            shifted = jnp.dot(r_ref[dy], a, preferred_element_type=f32)
            acc = acc + jnp.dot(shifted, band_ref[dy],
                                preferred_element_type=f32)
        return acc

    def bn_fold(s, q, gamma, beta):
        """Per-channel scale/shift, tiled onto the (W*Cout,) lane axis."""
        # T sums over the W pixel positions of each channel and broadcasts the
        # per-channel totals back over the lanes (one matmul, MXU is idle).
        sb = jnp.dot(s, t_ref[...], preferred_element_type=f32)
        qb = jnp.dot(q, t_ref[...], preferred_element_type=f32)
        mean = sb * inv_count
        var = qb * inv_count - mean * mean      # biased variance (training BN)
        # NOTE: E[x^2]-E[x]^2 can cancel for huge activations; fine here.
        scale = gamma * lax.rsqrt(var + BN_EPS)
        shift = beta - mean * scale
        return scale, shift

    # ---- phase 1: NCHW -> lane-packed, conv1, BN1 statistics ----------------
    y1 = []
    s1 = jnp.zeros((1, wc), f32)
    q1 = jnp.zeros((1, wc), f32)
    for n in range(N):
        a = jnp.zeros((H, W * Cin), f32)
        for ci in range(Cin):                   # NCHW->packed folded into MXU
            a = a + jnp.dot(x_ref[n, ci].astype(f32), e_ref[ci],
                            preferred_element_type=f32)
        y = conv(a, b1_ref)
        y1.append(y)
        s1 = s1 + jnp.sum(y, axis=0, keepdims=True)
        q1 = q1 + jnp.sum(y * y, axis=0, keepdims=True)

    scale1, shift1 = bn_fold(s1, q1, g1_ref[...], beta1_ref[...])

    # ---- phase 2: BN1 + ReLU fused into conv2 input, conv2, BN2 stats -------
    y2 = []
    s2 = jnp.zeros((1, wc), f32)
    q2 = jnp.zeros((1, wc), f32)
    for n in range(N):
        a1 = jnp.maximum(y1[n] * scale1 + shift1, 0.0)
        y = conv(a1, b2_ref)
        y2.append(y)
        s2 = s2 + jnp.sum(y, axis=0, keepdims=True)
        q2 = q2 + jnp.sum(y * y, axis=0, keepdims=True)

    scale2, shift2 = bn_fold(s2, q2, g2_ref[...], beta2_ref[...])

    # ---- phase 3: BN2 + ReLU + 2x2 max-pool (even/odd selection matmuls) ----
    for n in range(N):
        a2 = jnp.maximum(y2[n] * scale2 + shift2, 0.0)
        mh = jnp.maximum(
            jnp.dot(a2, gev_ref[...], preferred_element_type=f32),
            jnp.dot(a2, god_ref[...], preferred_element_type=f32))
        mv = jnp.maximum(
            jnp.dot(rev_ref[...], mh, preferred_element_type=f32),
            jnp.dot(rod_ref[...], mh, preferred_element_type=f32))
        o_ref[n] = mv.astype(o_ref.dtype)


# ----------------------------------------------------------------------------
# EncoderBlock forward (one pallas_call)
# ----------------------------------------------------------------------------
@jax.jit
def encoder_block(x_nchw, w1, g1, b1, w2, g2, b2):
    """x_nchw: (N, Cin, H, W); conv weights HWIO; returns NCHW output."""
    N, Cin, H, W = x_nchw.shape
    Cout = w1.shape[-1]
    assert H % 2 == 0 and W % 2 == 0, "MaxPool2d(2) requires even H and W"
    H2, W2 = H // 2, W // 2
    f32 = jnp.float32

    # ---- tiny selection / folded-weight matrices (built once under jit) -----
    # NCHW image (Cin, H, W) -> lane-packed (H, W*Cin):  A += x[ci] @ E[ci].
    e_sel = jax.nn.one_hot(
        jnp.arange(W)[None, :] * Cin + jnp.arange(Cin)[:, None],
        W * Cin, dtype=f32)                                   # (Cin, W, W*Cin)
    # Vertical tap shifts (SAME, pad=1): output row h uses input row h+dy-1.
    r_shift = jax.nn.one_hot(
        jnp.arange(H)[None, :] + jnp.arange(3)[:, None] - 1,
        H, dtype=f32)                                         # (3, H, H)

    def banded(wt, cin):
        """(3,3,cin,Cout) HWIO -> (3, W*cin, W*Cout) block-banded weights."""
        return jnp.stack([
            sum(jnp.kron(jnp.eye(W, k=1 - dx, dtype=f32), wt[dy, dx])
                for dx in range(3))
            for dy in range(3)])

    b1m = banded(w1, Cin)                                     # (3, W*Cin,  W*Cout)
    b2m = banded(w2, Cout)                                    # (3, W*Cout, W*Cout)
    # Per-channel sum over the W pixel positions, broadcast back over lanes.
    t_mat = jnp.kron(jnp.ones((W, W), f32), jnp.eye(Cout, dtype=f32))
    # 2x2 max-pool selectors (even/odd pixel columns, even/odd rows).
    lane = jnp.arange(W * Cout)
    wl, cl = lane // Cout, lane % Cout
    gev = jax.nn.one_hot(jnp.where(wl % 2 == 0, (wl // 2) * Cout + cl, -1),
                         W2 * Cout, dtype=f32)                # (W*Cout, W2*Cout)
    god = jax.nn.one_hot(jnp.where(wl % 2 == 1, (wl // 2) * Cout + cl, -1),
                         W2 * Cout, dtype=f32)
    rev = jax.nn.one_hot(2 * jnp.arange(H2), H, dtype=f32)    # (H2, H)
    rod = jax.nn.one_hot(2 * jnp.arange(H2) + 1, H, dtype=f32)
    # BN affine params tiled onto the lane-packed (pixel, channel) lane axis.
    g1t, b1t = jnp.tile(g1, W)[None, :], jnp.tile(b1, W)[None, :]
    g2t, b2t = jnp.tile(g2, W)[None, :], jnp.tile(b2, W)[None, :]

    out_packed = pl.pallas_call(
        encoder_kernel,
        out_shape=jax.ShapeDtypeStruct((N, H2, W2 * Cout), f32),
    )(x_nchw, e_sel, r_shift, b1m, b2m, t_mat, gev, god, rev, rod,
      g1t, b1t, g2t, b2t)

    # Packed (N, H2, W2*Cout) -> NCHW: one tiny (~4 KB) wrapper layout op.
    # TODO(synk): fold this final repack into the kernel (extra selection
    # matmuls) if a pure-NCHW HBM output is required with zero wrapper ops.
    return out_packed.reshape(N, H2, W2, Cout).transpose(0, 3, 1, 2)


# ----------------------------------------------------------------------------
# Pure-JAX reference (correctness check only)
# ----------------------------------------------------------------------------
def reference_encoder_block(x_nchw, w1, g1, b1, w2, g2, b2):
    x = jnp.transpose(x_nchw, (0, 2, 3, 1))

    def conv(x, w):
        return lax.conv_general_dilated(
            x, w, window_strides=(1, 1), padding="SAME",
            dimension_numbers=("NHWC", "HWIO", "NHWC"))

    def bn_relu_ref(y, g, b):
        mean = jnp.mean(y, axis=(0, 1, 2))
        var = jnp.mean((y - mean) ** 2, axis=(0, 1, 2))   # biased
        z = (y - mean) / jnp.sqrt(var + BN_EPS) * g + b
        return jnp.maximum(z, 0.0)

    a1 = bn_relu_ref(conv(x, w1), g1, b1)
    a2 = bn_relu_ref(conv(a1, w2), g2, b2)
    p = lax.reduce_window(a2, -jnp.inf, lax.max,
                          (1, 2, 2, 1), (1, 2, 2, 1), "VALID")
    return jnp.transpose(p, (0, 3, 1, 2))


# ----------------------------------------------------------------------------
if __name__ == "__main__":
    N, Cin, Cout, H, W = 2, 4, 8, 16, 16

    key = jax.random.PRNGKey(0)
    kx, kw1, kw2 = jax.random.split(key, 3)

    x = jax.random.normal(kx, (N, Cin, H, W), dtype=jnp.float32)
    # Conv weights in HWIO (transpose of PyTorch OIHW); deterministic init.
    w1 = 0.1 * jax.random.normal(kw1, (3, 3, Cin, Cout), dtype=jnp.float32)
    w2 = 0.1 * jax.random.normal(kw2, (3, 3, Cout, Cout), dtype=jnp.float32)
    # BatchNorm defaults: weight=1, bias=0.
    g1 = jnp.ones((Cout,), jnp.float32)
    b1 = jnp.zeros((Cout,), jnp.float32)
    g2 = jnp.ones((Cout,), jnp.float32)
    b2 = jnp.zeros((Cout,), jnp.float32)

    out = jax.block_until_ready(encoder_block(x, w1, g1, b1, w2, g2, b2))
    assert out.shape == (N, Cout, H // 2, W // 2), out.shape

    ref = jax.block_until_ready(
        reference_encoder_block(x, w1, g1, b1, w2, g2, b2))

    if not jnp.allclose(out, ref, rtol=2e-4, atol=2e-4):
        err = float(jnp.max(jnp.abs(out - ref)))
        raise AssertionError(
            f"Pallas EncoderBlock mismatch vs reference (max |err| = {err})")

    print("KERNEL_OK")
</pallas_src>

<mosaic_0001>
module attributes {stable_mosaic.version = 11 : i64} {
  func.func @encoder_kernel(%arg0: memref<2x4x16x16xf32, #tpu.memory_space<vmem>>, %arg1: memref<4x16x64xf32, #tpu.memory_space<vmem>>, %arg2: memref<3x16x16xf32, #tpu.memory_space<vmem>>, %arg3: memref<3x64x128xf32, #tpu.memory_space<vmem>>, %arg4: memref<3x128x128xf32, #tpu.memory_space<vmem>>, %arg5: memref<128x128xf32, #tpu.memory_space<vmem>>, %arg6: memref<128x64xf32, #tpu.memory_space<vmem>>, %arg7: memref<128x64xf32, #tpu.memory_space<vmem>>, %arg8: memref<8x16xf32, #tpu.memory_space<vmem>>, %arg9: memref<8x16xf32, #tpu.memory_space<vmem>>, %arg10: memref<1x128xf32, #tpu.memory_space<vmem>>, %arg11: memref<1x128xf32, #tpu.memory_space<vmem>>, %arg12: memref<1x128xf32, #tpu.memory_space<vmem>>, %arg13: memref<1x128xf32, #tpu.memory_space<vmem>>, %arg14: memref<2x8x64xf32, #tpu.memory_space<vmem>>) attributes {dimension_semantics = [], scalar_prefetch = 0 : i64, scratch_operands = 0 : i64, tpu.core_type = #tpu.core_type<tc>} {
    %cst = arith.constant 0.000000e+00 : f32
    %0 = vector.broadcast %cst : f32 to vector<1x128xf32>
    %cst_0 = arith.constant 0.000000e+00 : f32
    %1 = vector.broadcast %cst_0 : f32 to vector<1x128xf32>
    %cst_1 = arith.constant 0.000000e+00 : f32
    %2 = vector.broadcast %cst_1 : f32 to vector<16x64xf32>
    %c0 = arith.constant 0 : index
    %c0_2 = arith.constant 0 : index
    %c0_3 = arith.constant 0 : index
    %c0_4 = arith.constant 0 : index
    %3 = vector.load %arg0[%c0, %c0_2, %c0_3, %c0_4] : memref<2x4x16x16xf32, #tpu.memory_space<vmem>>, vector<1x1x16x16xf32>
    %4 = vector.shape_cast %3 : vector<1x1x16x16xf32> to vector<16x16xf32>
    %c0_5 = arith.constant 0 : index
    %c0_6 = arith.constant 0 : index
    %c0_7 = arith.constant 0 : index
    %5 = vector.load %arg1[%c0_5, %c0_6, %c0_7] : memref<4x16x64xf32, #tpu.memory_space<vmem>>, vector<1x16x64xf32>
    %6 = vector.shape_cast %5 : vector<1x16x64xf32> to vector<16x64xf32>
    %cst_8 = arith.constant dense<0.000000e+00> : vector<16x64xf32>
    %7 = tpu.matmul %4, %6, %cst_8 {dimension_numbers = #tpu.dot_dimension_numbers<[1], [0], [0], [1], [0, 0, 1, 1], [], []>} : vector<16x16xf32>, vector<16x64xf32>, vector<16x64xf32> -> vector<16x64xf32>
    %8 = arith.addf %2, %7 : vector<16x64xf32>
    %c0_9 = arith.constant 0 : index
    %c1 = arith.constant 1 : index
    %c0_10 = arith.constant 0 : index
    %c0_11 = arith.constant 0 : index
    %9 = vector.load %arg0[%c0_9, %c1, %c0_10, %c0_11] : memref<2x4x16x16xf32, #tpu.memory_space<vmem>>, vector<1x1x16x16xf32>
    %10 = vector.shape_cast %9 : vector<1x1x16x16xf32> to vector<16x16xf32>
    %c1_12 = arith.constant 1 : index
    %c0_13 = arith.constant 0 : index
    %c0_14 = arith.constant 0 : index
    %11 = vector.load %arg1[%c1_12, %c0_13, %c0_14] : memref<4x16x64xf32, #tpu.memory_space<vmem>>, vector<1x16x64xf32>
    %12 = vector.shape_cast %11 : vector<1x16x64xf32> to vector<16x64xf32>
    %cst_15 = arith.constant dense<0.000000e+00> : vector<16x64xf32>
    %13 = tpu.matmul %10, %12, %cst_15 {dimension_numbers = #tpu.dot_dimension_numbers<[1], [0], [0], [1], [0, 0, 1, 1], [], []>} : vector<16x16xf32>, vector<16x64xf32>, vector<16x64xf32> -> vector<16x64xf32>
    %14 = arith.addf %8, %13 : vector<16x64xf32>
    %c0_16 = arith.constant 0 : index
    %c2 = arith.constant 2 : index
    %c0_17 = arith.constant 0 : index
    %c0_18 = arith.constant 0 : index
    %15 = vector.load %arg0[%c0_16, %c2, %c0_17, %c0_18] : memref<2x4x16x16xf32, #tpu.memory_space<vmem>>, vector<1x1x16x16xf32>
    %16 = vector.shape_cast %15 : vector<1x1x16x16xf32> to vector<16x16xf32>
    %c2_19 = arith.constant 2 : index
    %c0_20 = arith.constant 0 : index
    %c0_21 = arith.constant 0 : index
    %17 = vector.load %arg1[%c2_19, %c0_20, %c0_21] : memref<4x16x64xf32, #tpu.memory_space<vmem>>, vector<1x16x64xf32>
    %18 = vector.shape_cast %17 : vector<1x16x64xf32> to vector<16x64xf32>
    %cst_22 = arith.constant dense<0.000000e+00> : vector<16x64xf32>
    %19 = tpu.matmul %16, %18, %cst_22 {dimension_numbers = #tpu.dot_dimension_numbers<[1], [0], [0], [1], [0, 0, 1, 1], [], []>} : vector<16x16xf32>, vector<16x64xf32>, vector<16x64xf32> -> vector<16x64xf32>
    %20 = arith.addf %14, %19 : vector<16x64xf32>
    %c0_23 = arith.constant 0 : index
    %c3 = arith.constant 3 : index
    %c0_24 = arith.constant 0 : index
    %c0_25 = arith.constant 0 : index
    %21 = vector.load %arg0[%c0_23, %c3, %c0_24, %c0_25] : memref<2x4x16x16xf32, #tpu.memory_space<vmem>>, vector<1x1x16x16xf32>
    %22 = vector.shape_cast %21 : vector<1x1x16x16xf32> to vector<16x16xf32>
    %c3_26 = arith.constant 3 : index
    %c0_27 = arith.constant 0 : index
    %c0_28 = arith.constant 0 : index
    %23 = vector.load %arg1[%c3_26, %c0_27, %c0_28] : memref<4x16x64xf32, #tpu.memory_space<vmem>>, vector<1x16x64xf32>
    %24 = vector.shape_cast %23 : vector<1x16x64xf32> to vector<16x64xf32>
    %cst_29 = arith.constant dense<0.000000e+00> : vector<16x64xf32>
    %25 = tpu.matmul %22, %24, %cst_29 {dimension_numbers = #tpu.dot_dimension_numbers<[1], [0], [0], [1], [0, 0, 1, 1], [], []>} : vector<16x16xf32>, vector<16x64xf32>, vector<16x64xf32> -> vector<16x64xf32>
    %26 = arith.addf %20, %25 : vector<16x64xf32>
    %c1_30 = arith.constant 1 : index
    %c0_31 = arith.constant 0 : index
    %c0_32 = arith.constant 0 : index
    %27 = vector.load %arg3[%c1_30, %c0_31, %c0_32] : memref<3x64x128xf32, #tpu.memory_space<vmem>>, vector<1x64x128xf32>
    %28 = vector.shape_cast %27 : vector<1x64x128xf32> to vector<64x128xf32>
    %cst_33 = arith.constant dense<0.000000e+00> : vector<16x128xf32>
    %29 = tpu.matmul %26, %28, %cst_33 {dimension_numbers = #tpu.dot_dimension_numbers<[1], [0], [0], [1], [0, 0, 1, 1], [], []>} : vector<16x64xf32>, vector<64x128xf32>, vector<16x128xf32> -> vector<16x128xf32>
    %c0_34 = arith.constant 0 : index
    %c0_35 = arith.constant 0 : index
    %c0_36 = arith.constant 0 : index
    %30 = vector.load %arg2[%c0_34, %c0_35, %c0_36] : memref<3x16x16xf32, #tpu.memory_space<vmem>>, vector<1x16x16xf32>
    %31 = vector.shape_cast %30 : vector<1x16x16xf32> to vector<16x16xf32>
    %cst_37 = arith.constant dense<0.000000e+00> : vector<16x64xf32>
    %32 = tpu.matmul %31, %26, %cst_37 {dimension_numbers = #tpu.dot_dimension_numbers<[1], [0], [0], [1], [0, 0, 1, 1], [], []>} : vector<16x16xf32>, vector<16x64xf32>, vector<16x64xf32> -> vector<16x64xf32>
    %c0_38 = arith.constant 0 : index
    %c0_39 = arith.constant 0 : index
    %c0_40 = arith.constant 0 : index
    %33 = vector.load %arg3[%c0_38, %c0_39, %c0_40] : memref<3x64x128xf32, #tpu.memory_space<vmem>>, vector<1x64x128xf32>
    %34 = vector.shape_cast %33 : vector<1x64x128xf32> to vector<64x128xf32>
    %cst_41 = arith.constant dense<0.000000e+00> : vector<16x128xf32>
    %35 = tpu.matmul %32, %34, %cst_41 {dimension_numbers = #tpu.dot_dimension_numbers<[1], [0], [0], [1], [0, 0, 1, 1], [], []>} : vector<16x64xf32>, vector<64x128xf32>, vector<16x128xf32> -> vector<16x128xf32>
    %36 = arith.addf %29, %35 : vector<16x128xf32>
    %c2_42 = arith.constant 2 : index
    %c0_43 = arith.constant 0 : index
    %c0_44 = arith.constant 0 : index
    %37 = vector.load %arg2[%c2_42, %c0_43, %c0_44] : memref<3x16x16xf32, #tpu.memory_space<vmem>>, vector<1x16x16xf32>
    %38 = vector.shape_cast %37 : vector<1x16x16xf32> to vector<16x16xf32>
    %cst_45 = arith.constant dense<0.000000e+00> : vector<16x64xf32>
    %39 = tpu.matmul %38, %26, %cst_45 {dimension_numbers = #tpu.dot_dimension_numbers<[1], [0], [0], [1], [0, 0, 1, 1], [], []>} : vector<16x16xf32>, vector<16x64xf32>, vector<16x64xf32> -> vector<16x64xf32>
    %c2_46 = arith.constant 2 : index
    %c0_47 = arith.constant 0 : index
    %c0_48 = arith.constant 0 : index
    %40 = vector.load %arg3[%c2_46, %c0_47, %c0_48] : memref<3x64x128xf32, #tpu.memory_space<vmem>>, vector<1x64x128xf32>
    %41 = vector.shape_cast %40 : vector<1x64x128xf32> to vector<64x128xf32>
    %cst_49 = arith.constant dense<0.000000e+00> : vector<16x128xf32>
    %42 = tpu.matmul %39, %41, %cst_49 {dimension_numbers = #tpu.dot_dimension_numbers<[1], [0], [0], [1], [0, 0, 1, 1], [], []>} : vector<16x64xf32>, vector<64x128xf32>, vector<16x128xf32> -> vector<16x128xf32>
    %43 = arith.addf %36, %42 : vector<16x128xf32>
    %cst_50 = arith.constant dense<0.000000e+00> : vector<128xf32>
    %44 = vector.multi_reduction <add>, %43, %cst_50 [0] : vector<16x128xf32> to vector<128xf32>
    %45 = vector.shape_cast %44 : vector<128xf32> to vector<1x128xf32>
    %46 = arith.addf %0, %45 : vector<1x128xf32>
    %47 = arith.mulf %43, %43 : vector<16x128xf32>
    %cst_51 = arith.constant dense<0.000000e+00> : vector<128xf32>
    %48 = vector.multi_reduction <add>, %47, %cst_51 [0] : vector<16x128xf32> to vector<128xf32>
    %49 = vector.shape_cast %48 : vector<128xf32> to vector<1x128xf32>
    %50 = arith.addf %1, %49 : vector<1x128xf32>
    %cst_52 = arith.constant 0.000000e+00 : f32
    %51 = vector.broadcast %cst_52 : f32 to vector<16x64xf32>
    %c1_53 = arith.constant 1 : index
    %c0_54 = arith.constant 0 : index
    %c0_55 = arith.constant 0 : index
    %c0_56 = arith.constant 0 : index
    %52 = vector.load %arg0[%c1_53, %c0_54, %c0_55, %c0_56] : memref<2x4x16x16xf32, #tpu.memory_space<vmem>>, vector<1x1x16x16xf32>
    %53 = vector.shape_cast %52 : vector<1x1x16x16xf32> to vector<16x16xf32>
    %c0_57 = arith.constant 0 : index
    %c0_58 = arith.constant 0 : index
    %c0_59 = arith.constant 0 : index
    %54 = vector.load %arg1[%c0_57, %c0_58, %c0_59] : memref<4x16x64xf32, #tpu.memory_space<vmem>>, vector<1x16x64xf32>
    %55 = vector.shape_cast %54 : vector<1x16x64xf32> to vector<16x64xf32>
    %cst_60 = arith.constant dense<0.000000e+00> : vector<16x64xf32>
    %56 = tpu.matmul %53, %55, %cst_60 {dimension_numbers = #tpu.dot_dimension_numbers<[1], [0], [0], [1], [0, 0, 1, 1], [], []>} : vector<16x16xf32>, vector<16x64xf32>, vector<16x64xf32> -> vector<16x64xf32>
    %57 = arith.addf %51, %56 : vector<16x64xf32>
    %c1_61 = arith.constant 1 : index
    %c1_62 = arith.constant 1 : index
    %c0_63 = arith.constant 0 : index
    %c0_64 = arith.constant 0 : index
    %58 = vector.load %arg0[%c1_61, %c1_62, %c0_63, %c0_64] : memref<2x4x16x16xf32, #tpu.memory_space<vmem>>, vector<1x1x16x16xf32>
    %59 = vector.shape_cast %58 : vector<1x1x16x16xf32> to vector<16x16xf32>
    %c1_65 = arith.constant 1 : index
    %c0_66 = arith.constant 0 : index
    %c0_67 = arith.constant 0 : index
    %60 = vector.load %arg1[%c1_65, %c0_66, %c0_67] : memref<4x16x64xf32, #tpu.memory_space<vmem>>, vector<1x16x64xf32>
    %61 = vector.shape_cast %60 : vector<1x16x64xf32> to vector<16x64xf32>
    %cst_68 = arith.constant dense<0.000000e+00> : vector<16x64xf32>
    %62 = tpu.matmul %59, %61, %cst_68 {dimension_numbers = #tpu.dot_dimension_numbers<[1], [0], [0], [1], [0, 0, 1, 1], [], []>} : vector<16x16xf32>, vector<16x64xf32>, vector<16x64xf32> -> vector<16x64xf32>
    %63 = arith.addf %57, %62 : vector<16x64xf32>
    %c1_69 = arith.constant 1 : index
    %c2_70 = arith.constant 2 : index
    %c0_71 = arith.constant 0 : index
    %c0_72 = arith.constant 0 : index
    %64 = vector.load %arg0[%c1_69, %c2_70, %c0_71, %c0_72] : memref<2x4x16x16xf32, #tpu.memory_space<vmem>>, vector<1x1x16x16xf32>
    %65 = vector.shape_cast %64 : vector<1x1x16x16xf32> to vector<16x16xf32>
    %c2_73 = arith.constant 2 : index
    %c0_74 = arith.constant 0 : index
    %c0_75 = arith.constant 0 : index
    %66 = vector.load %arg1[%c2_73, %c0_74, %c0_75] : memref<4x16x64xf32, #tpu.memory_space<vmem>>, vector<1x16x64xf32>
    %67 = vector.shape_cast %66 : vector<1x16x64xf32> to vector<16x64xf32>
    %cst_76 = arith.constant dense<0.000000e+00> : vector<16x64xf32>
    %68 = tpu.matmul %65, %67, %cst_76 {dimension_numbers = #tpu.dot_dimension_numbers<[1], [0], [0], [1], [0, 0, 1, 1], [], []>} : vector<16x16xf32>, vector<16x64xf32>, vector<16x64xf32> -> vector<16x64xf32>
    %69 = arith.addf %63, %68 : vector<16x64xf32>
    %c1_77 = arith.constant 1 : index
    %c3_78 = arith.constant 3 : index
    %c0_79 = arith.constant 0 : index
    %c0_80 = arith.constant 0 : index
    %70 = vector.load %arg0[%c1_77, %c3_78, %c0_79, %c0_80] : memref<2x4x16x16xf32, #tpu.memory_space<vmem>>, vector<1x1x16x16xf32>
    %71 = vector.shape_cast %70 : vector<1x1x16x16xf32> to vector<16x16xf32>
    %c3_81 = arith.constant 3 : index
    %c0_82 = arith.constant 0 : index
    %c0_83 = arith.constant 0 : index
    %72 = vector.load %arg1[%c3_81, %c0_82, %c0_83] : memref<4x16x64xf32, #tpu.memory_space<vmem>>, vector<1x16x64xf32>
    %73 = vector.shape_cast %72 : vector<1x16x64xf32> to vector<16x64xf32>
    %cst_84 = arith.constant dense<0.000000e+00> : vector<16x64xf32>
    %74 = tpu.matmul %71, %73, %cst_84 {dimension_numbers = #tpu.dot_dimension_numbers<[1], [0], [0], [1], [0, 0, 1, 1], [], []>} : vector<16x16xf32>, vector<16x64xf32>, vector<16x64xf32> -> vector<16x64xf32>
    %75 = arith.addf %69, %74 : vector<16x64xf32>
    %c1_85 = arith.constant 1 : index
    %c0_86 = arith.constant 0 : index
    %c0_87 = arith.constant 0 : index
    %76 = vector.load %arg3[%c1_85, %c0_86, %c0_87] : memref<3x64x128xf32, #tpu.memory_space<vmem>>, vector<1x64x128xf32>
    %77 = vector.shape_cast %76 : vector<1x64x128xf32> to vector<64x128xf32>
    %cst_88 = arith.constant dense<0.000000e+00> : vector<16x128xf32>
    %78 = tpu.matmul %75, %77, %cst_88 {dimension_numbers = #tpu.dot_dimension_numbers<[1], [0], [0], [1], [0, 0, 1, 1], [], []>} : vector<16x64xf32>, vector<64x128xf32>, vector<16x128xf32> -> vector<16x128xf32>
    %c0_89 = arith.constant 0 : index
    %c0_90 = arith.constant 0 : index
    %c0_91 = arith.constant 0 : index
    %79 = vector.load %arg2[%c0_89, %c0_90, %c0_91] : memref<3x16x16xf32, #tpu.memory_space<vmem>>, vector<1x16x16xf32>
    %80 = vector.shape_cast %79 : vector<1x16x16xf32> to vector<16x16xf32>
    %cst_92 = arith.constant dense<0.000000e+00> : vector<16x64xf32>
    %81 = tpu.matmul %80, %75, %cst_92 {dimension_numbers = #tpu.dot_dimension_numbers<[1], [0], [0], [1], [0, 0, 1, 1], [], []>} : vector<16x16xf32>, vector<16x64xf32>, vector<16x64xf32> -> vector<16x64xf32>
    %c0_93 = arith.constant 0 : index
    %c0_94 = arith.constant 0 : index
    %c0_95 = arith.constant 0 : index
    %82 = vector.load %arg3[%c0_93, %c0_94, %c0_95] : memref<3x64x128xf32, #tpu.memory_space<vmem>>, vector<1x64x128xf32>
    %83 = vector.shape_cast %82 : vector<1x64x128xf32> to vector<64x128xf32>
    %cst_96 = arith.constant dense<0.000000e+00> : vector<16x128xf32>
    %84 = tpu.matmul %81, %83, %cst_96 {dimension_numbers = #tpu.dot_dimension_numbers<[1], [0], [0], [1], [0, 0, 1, 1], [], []>} : vector<16x64xf32>, vector<64x128xf32>, vector<16x128xf32> -> vector<16x128xf32>
    %85 = arith.addf %78, %84 : vector<16x128xf32>
    %c2_97 = arith.constant 2 : index
    %c0_98 = arith.constant 0 : index
    %c0_99 = arith.constant 0 : index
    %86 = vector.load %arg2[%c2_97, %c0_98, %c0_99] : memref<3x16x16xf32, #tpu.memory_space<vmem>>, vector<1x16x16xf32>
    %87 = vector.shape_cast %86 : vector<1x16x16xf32> to vector<16x16xf32>
    %cst_100 = arith.constant dense<0.000000e+00> : vector<16x64xf32>
    %88 = tpu.matmul %87, %75, %cst_100 {dimension_numbers = #tpu.dot_dimension_numbers<[1], [0], [0], [1], [0, 0, 1, 1], [], []>} : vector<16x16xf32>, vector<16x64xf32>, vector<16x64xf32> -> vector<16x64xf32>
    %c2_101 = arith.constant 2 : index
    %c0_102 = arith.constant 0 : index
    %c0_103 = arith.constant 0 : index
    %89 = vector.load %arg3[%c2_101, %c0_102, %c0_103] : memref<3x64x128xf32, #tpu.memory_space<vmem>>, vector<1x64x128xf32>
    %90 = vector.shape_cast %89 : vector<1x64x128xf32> to vector<64x128xf32>
    %cst_104 = arith.constant dense<0.000000e+00> : vector<16x128xf32>
    %91 = tpu.matmul %88, %90, %cst_104 {dimension_numbers = #tpu.dot_dimension_numbers<[1], [0], [0], [1], [0, 0, 1, 1], [], []>} : vector<16x64xf32>, vector<64x128xf32>, vector<16x128xf32> -> vector<16x128xf32>
    %92 = arith.addf %85, %91 : vector<16x128xf32>
    %cst_105 = arith.constant dense<0.000000e+00> : vector<128xf32>
    %93 = vector.multi_reduction <add>, %92, %cst_105 [0] : vector<16x128xf32> to vector<128xf32>
    %94 = vector.shape_cast %93 : vector<128xf32> to vector<1x128xf32>
    %95 = arith.addf %46, %94 : vector<1x128xf32>
    %96 = arith.mulf %92, %92 : vector<16x128xf32>
    %cst_106 = arith.constant dense<0.000000e+00> : vector<128xf32>
    %97 = vector.multi_reduction <add>, %96, %cst_106 [0] : vector<16x128xf32> to vector<128xf32>
    %98 = vector.shape_cast %97 : vector<128xf32> to vector<1x128xf32>
    %99 = arith.addf %50, %98 : vector<1x128xf32>
    %c0_107 = arith.constant 0 : index
    %c0_108 = arith.constant 0 : index
    %100 = vector.load %arg10[%c0_107, %c0_108] : memref<1x128xf32, #tpu.memory_space<vmem>>, vector<1x128xf32>
    %c0_109 = arith.constant 0 : index
    %c0_110 = arith.constant 0 : index
    %101 = vector.load %arg11[%c0_109, %c0_110] : memref<1x128xf32, #tpu.memory_space<vmem>>, vector<1x128xf32>
    %c0_111 = arith.constant 0 : index
    %c0_112 = arith.constant 0 : index
    %102 = vector.load %arg5[%c0_111, %c0_112] : memref<128x128xf32, #tpu.memory_space<vmem>>, vector<128x128xf32>
    %cst_113 = arith.constant dense<0.000000e+00> : vector<1x128xf32>
    %103 = tpu.matmul %95, %102, %cst_113 {dimension_numbers = #tpu.dot_dimension_numbers<[1], [0], [0], [1], [0, 0, 1, 1], [], []>} : vector<1x128xf32>, vector<128x128xf32>, vector<1x128xf32> -> vector<1x128xf32>
    %c0_114 = arith.constant 0 : index
    %c0_115 = arith.constant 0 : index
    %104 = vector.load %arg5[%c0_114, %c0_115] : memref<128x128xf32, #tpu.memory_space<vmem>>, vector<128x128xf32>
    %cst_116 = arith.constant dense<0.000000e+00> : vector<1x128xf32>
    %105 = tpu.matmul %99, %104, %cst_116 {dimension_numbers = #tpu.dot_dimension_numbers<[1], [0], [0], [1], [0, 0, 1, 1], [], []>} : vector<1x128xf32>, vector<128x128xf32>, vector<1x128xf32> -> vector<1x128xf32>
    %cst_117 = arith.constant 0.001953125 : f32
    %106 = vector.broadcast %cst_117 : f32 to vector<1x128xf32>
    %107 = arith.mulf %103, %106 : vector<1x128xf32>
    %cst_118 = arith.constant 0.001953125 : f32
    %108 = vector.broadcast %cst_118 : f32 to vector<1x128xf32>
    %109 = arith.mulf %105, %108 : vector<1x128xf32>
    %110 = arith.mulf %107, %107 : vector<1x128xf32>
    %111 = arith.subf %109, %110 : vector<1x128xf32>
    %cst_119 = arith.constant 9.99999974E-6 : f32
    %112 = vector.broadcast %cst_119 : f32 to vector<1x128xf32>
    %113 = arith.addf %111, %112 : vector<1x128xf32>
    %114 = math.rsqrt %113 : vector<1x128xf32>
    %115 = arith.mulf %100, %114 : vector<1x128xf32>
    %116 = arith.mulf %107, %115 : vector<1x128xf32>
    %117 = arith.subf %101, %116 : vector<1x128xf32>
    %cst_120 = arith.constant 0.000000e+00 : f32
    %118 = vector.broadcast %cst_120 : f32 to vector<1x128xf32>
    %cst_121 = arith.constant 0.000000e+00 : f32
    %119 = vector.broadcast %cst_121 : f32 to vector<1x128xf32>
    %120 = vector.broadcast %115 : vector<1x128xf32> to vector<16x128xf32>
    %121 = arith.mulf %43, %120 : vector<16x128xf32>
    %122 = vector.broadcast %117 : vector<1x128xf32> to vector<16x128xf32>
    %123 = arith.addf %121, %122 : vector<16x128xf32>
    %cst_122 = arith.constant 0.000000e+00 : f32
    %124 = vector.broadcast %cst_122 : f32 to vector<16x128xf32>
    %125 = arith.maximumf %123, %124 : vector<16x128xf32>
    %c1_123 = arith.constant 1 : index
    %c0_124 = arith.constant 0 : index
    %c0_125 = arith.constant 0 : index
    %126 = vector.load %arg4[%c1_123, %c0_124, %c0_125] : memref<3x128x128xf32, #tpu.memory_space<vmem>>, vector<1x128x128xf32>
    %127 = vector.shape_cast %126 : vector<1x128x128xf32> to vector<128x128xf32>
    %cst_126 = arith.constant dense<0.000000e+00> : vector<16x128xf32>
    %128 = tpu.matmul %125, %127, %cst_126 {dimension_numbers = #tpu.dot_dimension_numbers<[1], [0], [0], [1], [0, 0, 1, 1], [], []>} : vector<16x128xf32>, vector<128x128xf32>, vector<16x128xf32> -> vector<16x128xf32>
    %c0_127 = arith.constant 0 : index
    %c0_128 = arith.constant 0 : index
    %c0_129 = arith.constant 0 : index
    %129 = vector.load %arg2[%c0_127, %c0_128, %c0_129] : memref<3x16x16xf32, #tpu.memory_space<vmem>>, vector<1x16x16xf32>
    %130 = vector.shape_cast %129 : vector<1x16x16xf32> to vector<16x16xf32>
    %cst_130 = arith.constant dense<0.000000e+00> : vector<16x128xf32>
    %131 = tpu.matmul %130, %125, %cst_130 {dimension_numbers = #tpu.dot_dimension_numbers<[1], [0], [0], [1], [0, 0, 1, 1], [], []>} : vector<16x16xf32>, vector<16x128xf32>, vector<16x128xf32> -> vector<16x128xf32>
    %c0_131 = arith.constant 0 : index
    %c0_132 = arith.constant 0 : index
    %c0_133 = arith.constant 0 : index
    %132 = vector.load %arg4[%c0_131, %c0_132, %c0_133] : memref<3x128x128xf32, #tpu.memory_space<vmem>>, vector<1x128x128xf32>
    %133 = vector.shape_cast %132 : vector<1x128x128xf32> to vector<128x128xf32>
    %cst_134 = arith.constant dense<0.000000e+00> : vector<16x128xf32>
    %134 = tpu.matmul %131, %133, %cst_134 {dimension_numbers = #tpu.dot_dimension_numbers<[1], [0], [0], [1], [0, 0, 1, 1], [], []>} : vector<16x128xf32>, vector<128x128xf32>, vector<16x128xf32> -> vector<16x128xf32>
    %135 = arith.addf %128, %134 : vector<16x128xf32>
    %c2_135 = arith.constant 2 : index
    %c0_136 = arith.constant 0 : index
    %c0_137 = arith.constant 0 : index
    %136 = vector.load %arg2[%c2_135, %c0_136, %c0_137] : memref<3x16x16xf32, #tpu.memory_space<vmem>>, vector<1x16x16xf32>
    %137 = vector.shape_cast %136 : vector<1x16x16xf32> to vector<16x16xf32>
    %cst_138 = arith.constant dense<0.000000e+00> : vector<16x128xf32>
    %138 = tpu.matmul %137, %125, %cst_138 {dimension_numbers = #tpu.dot_dimension_numbers<[1], [0], [0], [1], [0, 0, 1, 1], [], []>} : vector<16x16xf32>, vector<16x128xf32>, vector<16x128xf32> -> vector<16x128xf32>
    %c2_139 = arith.constant 2 : index
    %c0_140 = arith.constant 0 : index
    %c0_141 = arith.constant 0 : index
    %139 = vector.load %arg4[%c2_139, %c0_140, %c0_141] : memref<3x128x128xf32, #tpu.memory_space<vmem>>, vector<1x128x128xf32>
    %140 = vector.shape_cast %139 : vector<1x128x128xf32> to vector<128x128xf32>
    %cst_142 = arith.constant dense<0.000000e+00> : vector<16x128xf32>
    %141 = tpu.matmul %138, %140, %cst_142 {dimension_numbers = #tpu.dot_dimension_numbers<[1], [0], [0], [1], [0, 0, 1, 1], [], []>} : vector<16x128xf32>, vector<128x128xf32>, vector<16x128xf32> -> vector<16x128xf32>
    %142 = arith.addf %135, %141 : vector<16x128xf32>
    %cst_143 = arith.constant dense<0.000000e+00> : vector<128xf32>
    %143 = vector.multi_reduction <add>, %142, %cst_143 [0] : vector<16x128xf32> to vector<128xf32>
    %144 = vector.shape_cast %143 : vector<128xf32> to vector<1x128xf32>
    %145 = arith.addf %118, %144 : vector<1x128xf32>
    %146 = arith.mulf %142, %142 : vector<16x128xf32>
    %cst_144 = arith.constant dense<0.000000e+00> : vector<128xf32>
    %147 = vector.multi_reduction <add>, %146, %cst_144 [0] : vector<16x128xf32> to vector<128xf32>
    %148 = vector.shape_cast %147 : vector<128xf32> to vector<1x128xf32>
    %149 = arith.addf %119, %148 : vector<1x128xf32>
    %150 = vector.broadcast %115 : vector<1x128xf32> to vector<16x128xf32>
    %151 = arith.mulf %92, %150 : vector<16x128xf32>
    %152 = vector.broadcast %117 : vector<1x128xf32> to vector<16x128xf32>
    %153 = arith.addf %151, %152 : vector<16x128xf32>
    %cst_145 = arith.constant 0.000000e+00 : f32
    %154 = vector.broadcast %cst_145 : f32 to vector<16x128xf32>
    %155 = arith.maximumf %153, %154 : vector<16x128xf32>
    %c1_146 = arith.constant 1 : index
    %c0_147 = arith.constant 0 : index
    %c0_148 = arith.constant 0 : index
    %156 = vector.load %arg4[%c1_146, %c0_147, %c0_148] : memref<3x128x128xf32, #tpu.memory_space<vmem>>, vector<1x128x128xf32>
    %157 = vector.shape_cast %156 : vector<1x128x128xf32> to vector<128x128xf32>
    %cst_149 = arith.constant dense<0.000000e+00> : vector<16x128xf32>
    %158 = tpu.matmul %155, %157, %cst_149 {dimension_numbers = #tpu.dot_dimension_numbers<[1], [0], [0], [1], [0, 0, 1, 1], [], []>} : vector<16x128xf32>, vector<128x128xf32>, vector<16x128xf32> -> vector<16x128xf32>
    %c0_150 = arith.constant 0 : index
    %c0_151 = arith.constant 0 : index
    %c0_152 = arith.constant 0 : index
    %159 = vector.load %arg2[%c0_150, %c0_151, %c0_152] : memref<3x16x16xf32, #tpu.memory_space<vmem>>, vector<1x16x16xf32>
    %160 = vector.shape_cast %159 : vector<1x16x16xf32> to vector<16x16xf32>
    %cst_153 = arith.constant dense<0.000000e+00> : vector<16x128xf32>
    %161 = tpu.matmul %160, %155, %cst_153 {dimension_numbers = #tpu.dot_dimension_numbers<[1], [0], [0], [1], [0, 0, 1, 1], [], []>} : vector<16x16xf32>, vector<16x128xf32>, vector<16x128xf32> -> vector<16x128xf32>
    %c0_154 = arith.constant 0 : index
    %c0_155 = arith.constant 0 : index
    %c0_156 = arith.constant 0 : index
    %162 = vector.load %arg4[%c0_154, %c0_155, %c0_156] : memref<3x128x128xf32, #tpu.memory_space<vmem>>, vector<1x128x128xf32>
    %163 = vector.shape_cast %162 : vector<1x128x128xf32> to vector<128x128xf32>
    %cst_157 = arith.constant dense<0.000000e+00> : vector<16x128xf32>
    %164 = tpu.matmul %161, %163, %cst_157 {dimension_numbers = #tpu.dot_dimension_numbers<[1], [0], [0], [1], [0, 0, 1, 1], [], []>} : vector<16x128xf32>, vector<128x128xf32>, vector<16x128xf32> -> vector<16x128xf32>
    %165 = arith.addf %158, %164 : vector<16x128xf32>
    %c2_158 = arith.constant 2 : index
    %c0_159 = arith.constant 0 : index
    %c0_160 = arith.constant 0 : index
    %166 = vector.load %arg2[%c2_158, %c0_159, %c0_160] : memref<3x16x16xf32, #tpu.memory_space<vmem>>, vector<1x16x16xf32>
    %167 = vector.shape_cast %166 : vector<1x16x16xf32> to vector<16x16xf32>
    %cst_161 = arith.constant dense<0.000000e+00> : vector<16x128xf32>
    %168 = tpu.matmul %167, %155, %cst_161 {dimension_numbers = #tpu.dot_dimension_numbers<[1], [0], [0], [1], [0, 0, 1, 1], [], []>} : vector<16x16xf32>, vector<16x128xf32>, vector<16x128xf32> -> vector<16x128xf32>
    %c2_162 = arith.constant 2 : index
    %c0_163 = arith.constant 0 : index
    %c0_164 = arith.constant 0 : index
    %169 = vector.load %arg4[%c2_162, %c0_163, %c0_164] : memref<3x128x128xf32, #tpu.memory_space<vmem>>, vector<1x128x128xf32>
    %170 = vector.shape_cast %169 : vector<1x128x128xf32> to vector<128x128xf32>
    %cst_165 = arith.constant dense<0.000000e+00> : vector<16x128xf32>
    %171 = tpu.matmul %168, %170, %cst_165 {dimension_numbers = #tpu.dot_dimension_numbers<[1], [0], [0], [1], [0, 0, 1, 1], [], []>} : vector<16x128xf32>, vector<128x128xf32>, vector<16x128xf32> -> vector<16x128xf32>
    %172 = arith.addf %165, %171 : vector<16x128xf32>
    %cst_166 = arith.constant dense<0.000000e+00> : vector<128xf32>
    %173 = vector.multi_reduction <add>, %172, %cst_166 [0] : vector<16x128xf32> to vector<128xf32>
    %174 = vector.shape_cast %173 : vector<128xf32> to vector<1x128xf32>
    %175 = arith.addf %145, %174 : vector<1x128xf32>
    %176 = arith.mulf %172, %172 : vector<16x128xf32>
    %cst_167 = arith.constant dense<0.000000e+00> : vector<128xf32>
    %177 = vector.multi_reduction <add>, %176, %cst_167 [0] : vector<16x128xf32> to vector<128xf32>
    %178 = vector.shape_cast %177 : vector<128xf32> to vector<1x128xf32>
    %179 = arith.addf %149, %178 : vector<1x128xf32>
    %c0_168 = arith.constant 0 : index
    %c0_169 = arith.constant 0 : index
    %180 = vector.load %arg12[%c0_168, %c0_169] : memref<1x128xf32, #tpu.memory_space<vmem>>, vector<1x128xf32>
    %c0_170 = arith.constant 0 : index
    %c0_171 = arith.constant 0 : index
    %181 = vector.load %arg13[%c0_170, %c0_171] : memref<1x128xf32, #tpu.memory_space<vmem>>, vector<1x128xf32>
    %c0_172 = arith.constant 0 : index
    %c0_173 = arith.constant 0 : index
    %182 = vector.load %arg5[%c0_172, %c0_173] : memref<128x128xf32, #tpu.memory_space<vmem>>, vector<128x128xf32>
    %cst_174 = arith.constant dense<0.000000e+00> : vector<1x128xf32>
    %183 = tpu.matmul %175, %182, %cst_174 {dimension_numbers = #tpu.dot_dimension_numbers<[1], [0], [0], [1], [0, 0, 1, 1], [], []>} : vector<1x128xf32>, vector<128x128xf32>, vector<1x128xf32> -> vector<1x128xf32>
    %c0_175 = arith.constant 0 : index
    %c0_176 = arith.constant 0 : index
    %184 = vector.load %arg5[%c0_175, %c0_176] : memref<128x128xf32, #tpu.memory_space<vmem>>, vector<128x128xf32>
    %cst_177 = arith.constant dense<0.000000e+00> : vector<1x128xf32>
    %185 = tpu.matmul %179, %184, %cst_177 {dimension_numbers = #tpu.dot_dimension_numbers<[1], [0], [0], [1], [0, 0, 1, 1], [], []>} : vector<1x128xf32>, vector<128x128xf32>, vector<1x128xf32> -> vector<1x128xf32>
    %cst_178 = arith.constant 0.001953125 : f32
    %186 = vector.broadcast %cst_178 : f32 to vector<1x128xf32>
    %187 = arith.mulf %183, %186 : vector<1x128xf32>
    %cst_179 = arith.constant 0.001953125 : f32
    %188 = vector.broadcast %cst_179 : f32 to vector<1x128xf32>
    %189 = arith.mulf %185, %188 : vector<1x128xf32>
    %190 = arith.mulf %187, %187 : vector<1x128xf32>
    %191 = arith.subf %189, %190 : vector<1x128xf32>
    %cst_180 = arith.constant 9.99999974E-6 : f32
    %192 = vector.broadcast %cst_180 : f32 to vector<1x128xf32>
    %193 = arith.addf %191, %192 : vector<1x128xf32>
    %194 = math.rsqrt %193 : vector<1x128xf32>
    %195 = arith.mulf %180, %194 : vector<1x128xf32>
    %196 = arith.mulf %187, %195 : vector<1x128xf32>
    %197 = arith.subf %181, %196 : vector<1x128xf32>
    %198 = vector.broadcast %195 : vector<1x128xf32> to vector<16x128xf32>
    %199 = arith.mulf %142, %198 : vector<16x128xf32>
    %200 = vector.broadcast %197 : vector<1x128xf32> to vector<16x128xf32>
    %201 = arith.addf %199, %200 : vector<16x128xf32>
    %cst_181 = arith.constant 0.000000e+00 : f32
    %202 = vector.broadcast %cst_181 : f32 to vector<16x128xf32>
    %203 = arith.maximumf %201, %202 : vector<16x128xf32>
    %c0_182 = arith.constant 0 : index
    %c0_183 = arith.constant 0 : index
    %204 = vector.load %arg6[%c0_182, %c0_183] : memref<128x64xf32, #tpu.memory_space<vmem>>, vector<128x64xf32>
    %cst_184 = arith.constant dense<0.000000e+00> : vector<16x64xf32>
    %205 = tpu.matmul %203, %204, %cst_184 {dimension_numbers = #tpu.dot_dimension_numbers<[1], [0], [0], [1], [0, 0, 1, 1], [], []>} : vector<16x128xf32>, vector<128x64xf32>, vector<16x64xf32> -> vector<16x64xf32>
    %c0_185 = arith.constant 0 : index
    %c0_186 = arith.constant 0 : index
    %206 = vector.load %arg7[%c0_185, %c0_186] : memref<128x64xf32, #tpu.memory_space<vmem>>, vector<128x64xf32>
    %cst_187 = arith.constant dense<0.000000e+00> : vector<16x64xf32>
    %207 = tpu.matmul %203, %206, %cst_187 {dimension_numbers = #tpu.dot_dimension_numbers<[1], [0], [0], [1], [0, 0, 1, 1], [], []>} : vector<16x128xf32>, vector<128x64xf32>, vector<16x64xf32> -> vector<16x64xf32>
    %208 = arith.maximumf %205, %207 : vector<16x64xf32>
    %c0_188 = arith.constant 0 : index
    %c0_189 = arith.constant 0 : index
    %209 = vector.load %arg8[%c0_188, %c0_189] : memref<8x16xf32, #tpu.memory_space<vmem>>, vector<8x16xf32>
    %cst_190 = arith.constant dense<0.000000e+00> : vector<8x64xf32>
    %210 = tpu.matmul %209, %208, %cst_190 {dimension_numbers = #tpu.dot_dimension_numbers<[1], [0], [0], [1], [0, 0, 1, 1], [], []>} : vector<8x16xf32>, vector<16x64xf32>, vector<8x64xf32> -> vector<8x64xf32>
    %c0_191 = arith.constant 0 : index
    %c0_192 = arith.constant 0 : index
    %211 = vector.load %arg9[%c0_191, %c0_192] : memref<8x16xf32, #tpu.memory_space<vmem>>, vector<8x16xf32>
    %cst_193 = arith.constant dense<0.000000e+00> : vector<8x64xf32>
    %212 = tpu.matmul %211, %208, %cst_193 {dimension_numbers = #tpu.dot_dimension_numbers<[1], [0], [0], [1], [0, 0, 1, 1], [], []>} : vector<8x16xf32>, vector<16x64xf32>, vector<8x64xf32> -> vector<8x64xf32>
    %213 = arith.maximumf %210, %212 : vector<8x64xf32>
    %c0_194 = arith.constant 0 : index
    %c0_195 = arith.constant 0 : index
    %c0_196 = arith.constant 0 : index
    %214 = vector.load %arg14[%c0_194, %c0_195, %c0_196] : memref<2x8x64xf32, #tpu.memory_space<vmem>>, vector<1x8x64xf32>
    %215 = vector.shape_cast %214 : vector<1x8x64xf32> to vector<8x64xf32>
    %216 = vector.shape_cast %213 : vector<8x64xf32> to vector<1x8x64xf32>
    tpu.vector_store %arg14[%c0_194, %c0_195, %c0_196], %216 {strides = array<i32>} : memref<2x8x64xf32, #tpu.memory_space<vmem>>, vector<1x8x64xf32>,
    %217 = vector.broadcast %195 : vector<1x128xf32> to vector<16x128xf32>
    %218 = arith.mulf %172, %217 : vector<16x128xf32>
    %219 = vector.broadcast %197 : vector<1x128xf32> to vector<16x128xf32>
    %220 = arith.addf %218, %219 : vector<16x128xf32>
    %cst_197 = arith.constant 0.000000e+00 : f32
    %221 = vector.broadcast %cst_197 : f32 to vector<16x128xf32>
    %222 = arith.maximumf %220, %221 : vector<16x128xf32>
    %c0_198 = arith.constant 0 : index
    %c0_199 = arith.constant 0 : index
    %223 = vector.load %arg6[%c0_198, %c0_199] : memref<128x64xf32, #tpu.memory_space<vmem>>, vector<128x64xf32>
    %cst_200 = arith.constant dense<0.000000e+00> : vector<16x64xf32>
    %224 = tpu.matmul %222, %223, %cst_200 {dimension_numbers = #tpu.dot_dimension_numbers<[1], [0], [0], [1], [0, 0, 1, 1], [], []>} : vector<16x128xf32>, vector<128x64xf32>, vector<16x64xf32> -> vector<16x64xf32>
    %c0_201 = arith.constant 0 : index
    %c0_202 = arith.constant 0 : index
    %225 = vector.load %arg7[%c0_201, %c0_202] : memref<128x64xf32, #tpu.memory_space<vmem>>, vector<128x64xf32>
    %cst_203 = arith.constant dense<0.000000e+00> : vector<16x64xf32>
    %226 = tpu.matmul %222, %225, %cst_203 {dimension_numbers = #tpu.dot_dimension_numbers<[1], [0], [0], [1], [0, 0, 1, 1], [], []>} : vector<16x128xf32>, vector<128x64xf32>, vector<16x64xf32> -> vector<16x64xf32>
    %227 = arith.maximumf %224, %226 : vector<16x64xf32>
    %c0_204 = arith.constant 0 : index
    %c0_205 = arith.constant 0 : index
    %228 = vector.load %arg8[%c0_204, %c0_205] : memref<8x16xf32, #tpu.memory_space<vmem>>, vector<8x16xf32>
    %cst_206 = arith.constant dense<0.000000e+00> : vector<8x64xf32>
    %229 = tpu.matmul %228, %227, %cst_206 {dimension_numbers = #tpu.dot_dimension_numbers<[1], [0], [0], [1], [0, 0, 1, 1], [], []>} : vector<8x16xf32>, vector<16x64xf32>, vector<8x64xf32> -> vector<8x64xf32>
    %c0_207 = arith.constant 0 : index
    %c0_208 = arith.constant 0 : index
    %230 = vector.load %arg9[%c0_207, %c0_208] : memref<8x16xf32, #tpu.memory_space<vmem>>, vector<8x16xf32>
    %cst_209 = arith.constant dense<0.000000e+00> : vector<8x64xf32>
    %231 = tpu.matmul %230, %227, %cst_209 {dimension_numbers = #tpu.dot_dimension_numbers<[1], [0], [0], [1], [0, 0, 1, 1], [], []>} : vector<8x16xf32>, vector<16x64xf32>, vector<8x64xf32> -> vector<8x64xf32>
    %232 = arith.maximumf %229, %231 : vector<8x64xf32>
    %c1_210 = arith.constant 1 : index
    %c0_211 = arith.constant 0 : index
    %c0_212 = arith.constant 0 : index
    %233 = vector.load %arg14[%c1_210, %c0_211, %c0_212] : memref<2x8x64xf32, #tpu.memory_space<vmem>>, vector<1x8x64xf32>
    %234 = vector.shape_cast %233 : vector<1x8x64xf32> to vector<8x64xf32>
    %235 = vector.shape_cast %232 : vector<8x64xf32> to vector<1x8x64xf32>
    tpu.vector_store %arg14[%c1_210, %c0_211, %c0_212], %235 {strides = array<i32>} : memref<2x8x64xf32, #tpu.memory_space<vmem>>, vector<1x8x64xf32>,
    return
  }
}

</mosaic_0001>

<bundles_post_ra>
// kernel: tile.23
= control target key start
LH: loop header
LB: loop body
LE: loop exit
PB: predicated region body
PF: predicated region fallthrough
CT: control target
= control target key end

     0   :  { %s28_s0 = inlined_call_operand.vmem [shape: f32[8], index: 0, kind: input, shape index: {}]   ;;  %s29_s1 = inlined_call_operand.vmem [shape: f32[16,8], index: 1, kind: output, shape index: {}]  }
   0x1   :  { %v4_v0 = vld [vmem:[%s28_s0] ss:$0 sm:$0xff] }
   0x2   :  { %5 = vst [vmem:[%s29_s1] sm:$0xff] %v4_v0 }
   0x3   :  { %8 = vst [vmem:[%s29_s1 + $0x8] sm:$0xff] %v4_v0 }

// kernel: tile.24
= control target key start
LH: loop header
LB: loop body
LE: loop exit
PB: predicated region body
PF: predicated region fallthrough
CT: control target
= control target key end

     0   :  { %s131_s10 = smov 120   ;;  %s132_s11 = smov 104   ;;  %vm3_vm0 = vcmask 64512   ;;  %vm9_vm1 = vcmask 1048512   ;;  %vm15_vm2 = vcmask 982912   ;;  %vm21_vm3 = vcmask 917312   ;;  %s207_s0 = inlined_call_operand.vmem [shape: f32[16,8], index: 0, kind: input, shape index: {}]   ;;  %s208_s1 = inlined_call_operand.vmem [shape: f32[1,128], index: 1, kind: output, shape index: {}]  }
   0x1   :  { %v101_v0 = vld [vmem:[%s207_s0 + $0xf] sm:$0x1]   ;;  %v103_v1 = vld [vmem:[%s207_s0 + $0xd] sm:$0x1]   ;;  %v105_v2 = vld [vmem:[%s207_s0 + $0xb] sm:$0x1]  }
   0x2   :  { %7 = vrot.lane.b32.xlu0 %v101_v0, %s131_s10  ;;  %19 = vrot.lane.b32.xlu1 %v103_v1, %s132_s11  ;;  %s133_s14 = smov 88   ;;  %v102_v3 = vld [vmem:[%s207_s0 + $0xe] sm:$0x1]   ;;  %v104_v4 = vld [vmem:[%s207_s0 + $0xc] sm:$0x1]   ;;  %s134_s19 = smov 112  }
   0x3   :  { %31 = vrot.lane.b32.xlu2 %v105_v2, %s133_s14  ;;  %s135_s20 = smov 96   ;;  %v106_v5 = vld [vmem:[%s207_s0 + $0xa] sm:$0x1]   ;;  %s136_s23 = smov 80   ;;  %v107_v6 = vld [vmem:[%s207_s0 + $0x9] sm:$0x1]  }
   0x4   :  { %v108_v7 = vld [vmem:[%s207_s0 + $0x8] sm:$0x1]   ;;  %s137_s28 = smov 72   ;;  %s138_s29 = smov 64   ;;  %v109_v8 = vld [vmem:[%s207_s0 + $0x7] sm:$0x1]  }
   0x5   :  { %s139_s3 = smov 56   ;;  %v110_v9 = vld [vmem:[%s207_s0 + $0x6] sm:$0x1]   ;;  %v111_v10 = vld [vmem:[%s207_s0 + $0x5] sm:$0x1]   ;;  %s140_s8 = smov 48  }
   0x6   :  { %s141_s9 = smov 40   ;;  %v112_v11 = vld [vmem:[%s207_s0 + $0x4] sm:$0x1]   ;;  %s142_s12 = smov 32   ;;  %v113_v12 = vld [vmem:[%s207_s0 + $0x3] sm:$0x1]  }
   0x7   :  { %v114_v13 = vld [vmem:[%s207_s0 + $0x2] sm:$0x1]   ;;  %s143_s17 = smov 24   ;;  %s144_s18 = smov 16   ;;  %v115_v14 = vld [vmem:[%s207_s0 + $0x1] sm:$0x1]  }
   0x8   :  { %s145_s21 = smov 8   ;;  %v2_v15 = vld [vmem:[%s207_s0] sm:$0x1]   ;;  %vm27_vm4 = vcmask 851712   ;;  %vm33_vm5 = vcmask 786112   ;;  %vm39_vm6 = vcmask 720512  }
   0x9   :  { %4 = vst.msk [vmem:[#allocation0] sm:$0x1] %vm3_vm0, %v2_v15   ;;  %vm45_vm7 = vcmask 654912   ;;  %vm51_vm8 = vcmask 589312   ;;  %vm57_vm9 = vcmask 523712   ;;  %vm63_vm10 = vcmask 458112  }
   0xa   :  { %13 = vrot.lane.b32.xlu0 %v102_v3, %s134_s19  ;;  %25 = vrot.lane.b32.xlu1 %v104_v4, %s135_s20  ;;  %vm69_vm11 = vcmask 392512   ;;  %vm75_vm12 = vcmask 326912   ;;  %vm81_vm13 = vcmask 261312   ;;  %vm87_vm14 = vcmask 195712  }
   0xb   :  { %37 = vrot.lane.b32.xlu2 %v106_v5, %s136_s23  ;;  %vm93_vm15 = vcmask 130112  }
  0x12   :  { %43 = vrot.lane.b32.xlu0 %v107_v6, %s137_s28  ;;  %49 = vrot.lane.b32.xlu1 %v108_v7, %s138_s29 }
  0x13   :  { %55 = vrot.lane.b32.xlu2 %v109_v8, %s139_s3 }
  0x1a   :  { %61 = vrot.lane.b32.xlu0 %v110_v9, %s140_s8  ;;  %67 = vrot.lane.b32.xlu1 %v111_v10, %s141_s9 }
  0x1b   :  { %73 = vrot.lane.b32.xlu2 %v112_v11, %s142_s12 }
  0x22   :  { %79 = vrot.lane.b32.xlu0 %v113_v12, %s143_s17  ;;  %85 = vrot.lane.b32.xlu1 %v114_v13, %s144_s18 }
  0x23   :  { %91 = vrot.lane.b32.xlu2 %v115_v14, %s145_s21 }
  0x5d   :  { %v32_v16 = vpop.permute.xlu2 %31  }
  0x65   :  { %v38_v17 = vpop.permute.xlu2 %37  }
  0x6d   :  { %v56_v18 = vpop.permute.xlu2 %55  }
  0x74   :  { %v8_v19 = vpop.permute.xlu0 %7   ;;  %v20_v20 = vpop.permute.xlu1 %19  }
  0x75   :  { %10 = vst.msk [vmem:[#allocation0] sm:$0x1] %vm9_vm1, %v8_v19   ;;  %v74_v21 = vpop.permute.xlu2 %73  }
  0x7c   :  { %v14_v22 = vpop.permute.xlu0 %13   ;;  %v26_v23 = vpop.permute.xlu1 %25  }
  0x7d   :  { %16 = vst.msk [vmem:[#allocation0] sm:$0x1] %vm15_vm2, %v14_v22   ;;  %v92_v24 = vpop.permute.xlu2 %91  }
  0x7e   :  { %22 = vst.msk [vmem:[#allocation0] sm:$0x1] %vm21_vm3, %v20_v20  }
  0x7f   :  { %28 = vst.msk [vmem:[#allocation0] sm:$0x1] %vm27_vm4, %v26_v23  }
  0x80   :  { %34 = vst.msk [vmem:[#allocation0] sm:$0x1] %vm33_vm5, %v32_v16  }
  0x81   :  { %40 = vst.msk [vmem:[#allocation0] sm:$0x1] %vm39_vm6, %v38_v17  }
  0x84   :  { %v44_v25 = vpop.permute.xlu0 %43   ;;  %v50_v26 = vpop.permute.xlu1 %49  }
  0x85   :  { %46 = vst.msk [vmem:[#allocation0] sm:$0x1] %vm45_vm7, %v44_v25  }
  0x86   :  { %52 = vst.msk [vmem:[#allocation0] sm:$0x1] %vm51_vm8, %v50_v26  }
  0x87   :  { %58 = vst.msk [vmem:[#allocation0] sm:$0x1] %vm57_vm9, %v56_v18  }
  0x8c   :  { %v62_v27 = vpop.permute.xlu0 %61   ;;  %v68_v28 = vpop.permute.xlu1 %67  }
  0x8d   :  { %64 = vst.msk [vmem:[#allocation0] sm:$0x1] %vm63_vm10, %v62_v27  }
  0x8e   :  { %70 = vst.msk [vmem:[#allocation0] sm:$0x1] %vm69_vm11, %v68_v28  }
  0x8f   :  { %76 = vst.msk [vmem:[#allocation0] sm:$0x1] %vm75_vm12, %v74_v21  }
  0x94   :  { %v80_v29 = vpop.permute.xlu0 %79   ;;  %v86_v30 = vpop.permute.xlu1 %85  }
  0x95   :  { %82 = vst.msk [vmem:[#allocation0] sm:$0x1] %vm81_vm13, %v80_v29  }
  0x96   :  { %88 = vst.msk [vmem:[#allocation0] sm:$0x1] %vm87_vm14, %v86_v30  }
  0x97   :  { %94 = vst.msk [vmem:[#allocation0] sm:$0x1] %vm93_vm15, %v92_v24  }
  0x9e   :  { %v97_v31 = vld [vmem:[#allocation0] sm:$0x1] }
  0x9f   :  { %100 = vst [vmem:[%s208_s1] sm:$0x1] %v97_v31 }

// kernel: encoder_block.1
= control target key start
LH: loop header
LB: loop body
LE: loop exit
PB: predicated region body
PF: predicated region fallthrough
CT: control target
= control target key end

     0   :  { %vm57_vm0 = vcmask 130048   ;;  %vm238_vm1 = vcmask 523264   ;;  %s2659_s1 = inlined_call_operand.vmem [shape: f32[4,16,64], index: 1, kind: input, shape index: {}]   ;;  %s2660_s0 = inlined_call_operand.vmem [shape: f32[2,4,16,16], index: 0, kind: input, shape index: {}]   ;;  %s2661_s3 = inlined_call_operand.vmem [shape: f32[3,64,128], index: 3, kind: input, shape index: {}]   ;;  %s2662_s2 = inlined_call_operand.vmem [shape: f32[3,16,16], index: 2, kind: input, shape index: {}]   ;;  %s2663_s5 = inlined_call_operand.vmem [shape: f32[128,128], index: 5, kind: input, shape index: {}]   ;;  %s2664_s4 = inlined_call_operand.vmem [shape: f32[3,128,128], index: 4, kind: input, shape index: {}]   ;;  %s2665_s10 = inlined_call_operand.vmem [shape: f32[1,128], index: 10, kind: input, shape index: {}]   ;;  %s2666_s11 = inlined_call_operand.vmem [shape: f32[1,128], index: 11, kind: input, shape index: {}]   ;;  %s2667_s6 = inlined_call_operand.vmem [shape: f32[128,64], index: 6, kind: input, shape index: {}]   ;;  %s2668_s7 = inlined_call_operand.vmem [shape: f32[128,64], index: 7, kind: input, shape index: {}]   ;;  %s2669_s12 = inlined_call_operand.vmem [shape: f32[1,128], index: 12, kind: input, shape index: {}]   ;;  %s2670_s13 = inlined_call_operand.vmem [shape: f32[1,128], index: 13, kind: input, shape index: {}]   ;;  %s2671_s8 = inlined_call_operand.vmem [shape: f32[8,16], index: 8, kind: input, shape index: {}]   ;;  %s2672_s9 = inlined_call_operand.vmem [shape: f32[8,16], index: 9, kind: input, shape index: {}]   ;;  %s2673_s14 = inlined_call_operand.vmem [shape: f32[2,8,64], index: 14, kind: output, shape index: {}]  }
   0x1   :  { %v1632_v0 = vld [vmem:[%s2659_s1 + $0x28] sm:$0xff]  ;;  %v1637_v1 = vld [vmem:[%s2659_s1 + $0x20] sm:$0xff]  ;;  %v1642_v2 = vld [vmem:[%s2659_s1 + $0x38] sm:$0xff] }
   0x2   :  { %142 = vmatpush.msra.mxu2 %v1632_v0  ;;  %179 = vmatpush.msra.mxu3 %v1642_v2  ;;  %v1437_v3 = vld [vmem:[%s2660_s0 + $0x20] sm:$0xff]  ;;  %v1652_v4 = vld [vmem:[%s2659_s1 + $0x18] sm:$0xff]  ;;  %v50_v5 = vld [vmem:[%s2659_s1 + $0x8] sm:$0xff] }
   0x3   :  { %78 = vmatpush.msra.mxu0 %v1652_v4  ;;  %107 = vmatpush.msra.mxu1 %v50_v5  ;;  %v1661_v6 = vld [vmem:[%s2659_s1 + $0x30] sm:$0xff]  ;;  %v49_v9 = vld [vmem:[%s2659_s1] sm:$0xff]  ;;  %v1688_v12 = vld [vmem:[%s2661_s3 + $0x78] sm:$0xff] }
   0x4   :  { %v1443_v7 = vld [vmem:[%s2660_s0 + $0x30] sm:$0xff]  ;;  %143 = vmatpush.msra.mxu2 %v1637_v1  ;;  %180 = vmatpush.msra.mxu3 %v1661_v6  ;;  %v47_v11 = vld [vmem:[%s2660_s0] sm:$0xff]  ;;  %v1701_v14 = vld [vmem:[%s2661_s3 + $0x68] sm:$0xff] }
   0x5   :  { %v1669_v8 = vld [vmem:[%s2659_s1 + $0x10] sm:$0xff]  ;;  %1441 = vmatmul.msk.f32.vlgmr.msra.gmra.mxu2 %vm57_vm0, %v1437_v3  ;;  %1447 = vmatmul.msk.f32.vlgmr.msra.gmra.mxu3 %vm57_vm0, %v1443_v7  ;;  %v1438_v15 = vld [vmem:[%s2660_s0 + $0x28] sm:$0xff]  ;;  %v1444_v16 = vld [vmem:[%s2660_s0 + $0x38] sm:$0xff] }
   0x6   :  { %v1429_v10 = vld [vmem:[%s2660_s0 + $0x10] sm:$0xff]  ;;  %79 = vmatpush.msra.mxu0 %v1669_v8  ;;  %108 = vmatpush.msra.mxu1 %v49_v9  ;;  %v1713_v17 = vld [vmem:[%s2661_s3 + $0x60] sm:$0xff]  ;;  %v1430_v18 = vld [vmem:[%s2660_s0 + $0x18] sm:$0xff] }
   0x7   :  { %1433 = vmatmul.msk.f32.vlgmr.msra.gmra.mxu0 %vm57_vm0, %v1429_v10  ;;  %1435 = vmatmul.msk.f32.vlgmr.msra.gmra.mxu1 %vm57_vm0, %v47_v11  ;;  %v1695_v13 = vld [vmem:[%s2661_s3 + $0x70] sm:$0xff]  ;;  %v48_v19 = vld [vmem:[%s2660_s0 + $0x8] sm:$0xff]  ;;  %v1730_v20 = vld [vmem:[%s2661_s3 + $0x58] sm:$0xff] }
   0x8   :  { %282 = vmatpush.msrb.mxu2 %v1688_v12  ;;  %v1736_v21 = vld [vmem:[%s2661_s3 + $0x50] sm:$0xff]  ;;  %v1450_v22 = vld [vmem:[%s2661_s3 + $0x48] sm:$0xff]  ;;  %v1449_v23 = vld [vmem:[%s2661_s3 + $0x40] sm:$0xff] }
   0x9   :  { %v237_v24 = vld [vmem:[%s2661_s3 + $0x38] sm:$0xff]  ;;  %v236_v25 = vld [vmem:[%s2661_s3 + $0x30] sm:$0xff]  ;;  %v235_v26 = vld [vmem:[%s2661_s3 + $0x28] sm:$0xff] }
   0xa   :  { %283 = vmatpush.msrb.mxu2 %v1695_v13  ;;  %253 = vmatpush.msrb.mxu1 %v237_v24  ;;  %v234_v30 = vld [vmem:[%s2661_s3 + $0x20] sm:$0xff]  ;;  %v233_v31 = vld [vmem:[%s2661_s3 + $0x18] sm:$0xff]  ;;  %v1782_v46 = vld [vmem:[%s2661_s3 + $0xb0] sm:$0xff] }
   0xb   :  { %v1765_v43 = vld [vmem:[%s2662_s2] sm:$0xff]  ;;  %v1775_v45 = vld [vmem:[%s2661_s3 + $0xb8] sm:$0xff]  ;;  %v1793_v47 = vld [vmem:[%s2662_s2 + $0x8] sm:$0xff] }
   0xc   :  { %284 = vmatpush.msrb.mxu2 %v1701_v14  ;;  %254 = vmatpush.msrb.mxu1 %v236_v25  ;;  %v1770_v44 = vld [vmem:[%s2662_s2 + $0x20] sm:$0xff]  ;;  %v1799_v48 = vld [vmem:[%s2662_s2 + $0x28] sm:$0xff]  ;;  %v232_v49 = vld [vmem:[%s2661_s3 + $0x10] sm:$0xff] }
   0xd   :  { %1442 = vmatmul.msk.f32.gmra.mxu2 %vm57_vm0, %v1438_v15  ;;  %1448 = vmatmul.msk.f32.gmra.mxu3 %vm57_vm0, %v1444_v16  ;;  %v1816_v50 = vld [vmem:[%s2661_s3 + $0xa8] sm:$0xff]  ;;  %v1825_v52 = vld [vmem:[%s2661_s3 + $0xa0] sm:$0xff]  ;;  %v1834_v54 = vld [vmem:[%s2661_s3 + $0x98] sm:$0xff] }
   0xe   :  { %285 = vmatpush.msrb.mxu2 %v1713_v17  ;;  %255 = vmatpush.msrb.mxu1 %v235_v26  ;;  %v231_v51 = vld [vmem:[%s2661_s3 + $0x8] sm:$0xff]  ;;  %v230_v53 = vld [vmem:[%s2661_s3] sm:$0xff]  ;;  %v1840_v55 = vld [vmem:[%s2661_s3 + $0x90] sm:$0xff] }
   0xf   :  { %1434 = vmatmul.msk.f32.gmra.mxu0 %vm57_vm0, %v1430_v18  ;;  %1436 = vmatmul.msk.f32.gmra.mxu1 %vm57_vm0, %v48_v19  ;;  %v1847_v56 = vld [vmem:[%s2661_s3 + $0x88] sm:$0xff]  ;;  %v1854_v57 = vld [vmem:[%s2661_s3 + $0x80] sm:$0xff] }
  0x10   :  { %286 = vmatpush.msrb.mxu2 %v1730_v20  ;;  %256 = vmatpush.msrb.mxu1 %v234_v30  ;;  %v1477_v58 = vld [vmem:[%s2660_s0 + $0x40] sm:$0xff]  ;;  %v1478_v60 = vld [vmem:[%s2660_s0 + $0x48] sm:$0xff] }
  0x11   :  { %v1485_v59 = vld [vmem:[%s2660_s0 + $0x60] sm:$0xff]  ;;  %v1486_v61 = vld [vmem:[%s2660_s0 + $0x68] sm:$0xff] }
  0x12   :  { %287 = vmatpush.msrb.mxu2 %v1736_v21  ;;  %257 = vmatpush.msrb.mxu1 %v233_v31 }
  0x14   :  { %288 = vmatpush.msrb.mxu2 %v1450_v22  ;;  %258 = vmatpush.msrb.mxu1 %v232_v49 }
  0x16   :  { %289 = vmatpush.msrb.mxu2 %v1449_v23  ;;  %259 = vmatpush.msrb.mxu1 %v231_v51 }
  0x18   :  { %442 = vmatpush.msra.mxu2 %v50_v5  ;;  %260 = vmatpush.msrb.mxu1 %v230_v53  ;;  %v1490_v5 = vld [vmem:[%s2660_s0 + $0x78] sm:$0xff] }
  0x1a   :  { %443 = vmatpush.msra.mxu2 %v49_v9  ;;  %1548 = vmatpush.msra.mxu1 %v1652_v4 }
  0x1c   :  { %1549 = vmatpush.msra.mxu1 %v1669_v8 }
  0x84   :  { %v81_v27 = vpop.f32.mrf.mxu0  ;;  %v110_v28 = vpop.f32.mrf.mxu1 }
  0x85   :  { %v111_v29 = vadd.f32 %v110_v28, %v81_v27 }
  0x88   :  { %v145_v32 = vpop.f32.mrf.mxu2  ;;  %v182_v33 = vpop.f32.mrf.mxu3 }
  0x89   :  { %v151_v34 = vadd.f32 %v145_v32, %v111_v29 }
  0x8b   :  { %v188_v35 = vadd.f32 %v182_v33, %v151_v34 }
  0x8c   :  { %v84_v36 = vpop.f32.mrf.mxu0  ;;  %v113_v37 = vpop.f32.mrf.mxu1 }
  0x8d   :  { %1461 = vmatmul.msk.f32.vlgmr.msrb.gmra.mxu2 %vm238_vm1, %v188_v35  ;;  %v114_v38 = vadd.f32 %v113_v37, %v84_v36  ;;  %v1940_v36 = vld [vmem:[%s2663_s5 + $0x68] sm:$0xff]  ;;  %v1947_v37 = vld [vmem:[%s2663_s5 + $0x60] sm:$0xff] }
  0x8e   :  { %556 = vmatpush.msrb.mxu2 %v237_v24 }
  0x90   :  { %v148_v39 = vpop.f32.mrf.mxu2  ;;  %v185_v40 = vpop.f32.mrf.mxu3  ;;  %557 = vmatpush.msrb.mxu2 %v236_v25 }
  0x91   :  { %v152_v41 = vadd.f32 %v148_v39, %v114_v38  ;;  %v1953_v38 = vld [vmem:[%s2663_s5 + $0x58] sm:$0xff]  ;;  %v1961_v39 = vld [vmem:[%s2663_s5 + $0x50] sm:$0xff] }
  0x92   :  { %558 = vmatpush.msrb.mxu2 %v235_v26 }
  0x93   :  { %v189_v42 = vadd.f32 %v185_v40, %v152_v41  ;;  %v1968_v40 = vld [vmem:[%s2663_s5 + $0x48] sm:$0xff]  ;;  %v1975_v41 = vld [vmem:[%s2663_s5 + $0x40] sm:$0xff] }
  0x94   :  { %559 = vmatpush.msrb.mxu2 %v234_v30  ;;  %v1922_v30 = vld [vmem:[%s2663_s5 + $0x78] sm:$0xff] }
  0x95   :  { %221 = vmatpush.msrb.mxu0 %v189_v42  ;;  %1462 = vmatmul.msk.f32.gmra.mxu2 %vm238_vm1, %v189_v42 }
  0x96   :  { %320 = vmatpush.msrb.mxu3 %v189_v42  ;;  %560 = vmatpush.msrb.mxu2 %v233_v31  ;;  %v1982_v42 = vld [vmem:[%s2663_s5 + $0x38] sm:$0xff] }
  0x97   :  { %222 = vmatpush.msrb.mxu0 %v188_v35 }
  0x98   :  { %321 = vmatpush.msrb.mxu3 %v188_v35  ;;  %1457 = vmatmul.msk.f32.vlgmr.msrb.gmra.mxu0 %vm57_vm0, %v1765_v43  ;;  %v1933_v35 = vld [vmem:[%s2663_s5 + $0x70] sm:$0xff] }
  0x99   :  { %1465 = vmatmul.msk.f32.vlgmr.msrb.gmra.mxu3 %vm57_vm0, %v1770_v44  ;;  %352 = vmatpush.msra.mxu0 %v1775_v45 }
  0x9a   :  { %474 = vmatpush.msra.mxu3 %v1632_v0  ;;  %561 = vmatpush.msrb.mxu2 %v232_v49  ;;  %v2003_v49 = vld [vmem:[%s2663_s5 + $0x20] sm:$0xff] }
  0x9b   :  { %353 = vmatpush.msra.mxu0 %v1782_v46 }
  0x9c   :  { %475 = vmatpush.msra.mxu3 %v1637_v1  ;;  %562 = vmatpush.msrb.mxu2 %v231_v51  ;;  %v1480_v1 = vld [vmem:[%s2660_s0 + $0x58] sm:$0xff]  ;;  %v2016_v51 = vld [vmem:[%s2663_s5 + $0x10] sm:$0xff] }
  0x9d   :  { %354 = vmatpush.msra.mxu0 %v1816_v50  ;;  %1483 = vmatmul.msk.f32.vlgmr.msra.gmra.mxu2 %vm57_vm0, %v1477_v58 }
  0x9e   :  { %585 = vmatpush.msrb.mxu3 %v1688_v12  ;;  %563 = vmatpush.msrb.mxu2 %v230_v53  ;;  %v2029_v53 = vld [vmem:[%s2663_s5] sm:$0xff] }
  0x9f   :  { %355 = vmatpush.msra.mxu0 %v1825_v52 }
  0xa0   :  { %586 = vmatpush.msrb.mxu3 %v1695_v13  ;;  %1458 = vmatmul.msk.f32.gmra.mxu0 %vm57_vm0, %v1793_v47 }
  0xa1   :  { %1466 = vmatmul.msk.f32.gmra.mxu3 %vm57_vm0, %v1799_v48  ;;  %356 = vmatpush.msra.mxu0 %v1834_v54 }
  0xa2   :  { %587 = vmatpush.msrb.mxu3 %v1701_v14  ;;  %690 = vmatpush.msra.mxu2 %v1922_v30 }
  0xa3   :  { %357 = vmatpush.msra.mxu0 %v1840_v55 }
  0xa4   :  { %588 = vmatpush.msrb.mxu3 %v1713_v17  ;;  %691 = vmatpush.msra.mxu2 %v1933_v35 }
  0xa5   :  { %358 = vmatpush.msra.mxu0 %v1847_v56  ;;  %1484 = vmatmul.msk.f32.gmra.mxu2 %vm57_vm0, %v1478_v60 }
  0xa6   :  { %589 = vmatpush.msrb.mxu3 %v1730_v20  ;;  %692 = vmatpush.msra.mxu2 %v1940_v36 }
  0xa7   :  { %359 = vmatpush.msra.mxu0 %v1854_v57 }
  0xa8   :  { %590 = vmatpush.msrb.mxu3 %v1736_v21  ;;  %693 = vmatpush.msra.mxu2 %v1947_v37 }
  0xa9   :  { %413 = vmatpush.msrb.mxu0 %v1652_v4  ;;  %1487 = vmatmul.msk.f32.vlgmr.msra.gmra.mxu3 %vm57_vm0, %v1485_v59  ;;  %v1479_v4 = vld [vmem:[%s2660_s0 + $0x50] sm:$0xff] }
  0xaa   :  { %591 = vmatpush.msrb.mxu3 %v1450_v22  ;;  %694 = vmatpush.msra.mxu2 %v1953_v38 }
  0xab   :  { %414 = vmatpush.msrb.mxu0 %v1669_v8 }
  0xac   :  { %592 = vmatpush.msrb.mxu3 %v1449_v23  ;;  %695 = vmatpush.msra.mxu2 %v1961_v39 }
  0xae   :  { %710 = vmatpush.msra.mxu3 %v1922_v30  ;;  %696 = vmatpush.msra.mxu2 %v1968_v40 }
  0xb0   :  { %711 = vmatpush.msra.mxu3 %v1933_v35  ;;  %697 = vmatpush.msra.mxu2 %v1975_v41 }
  0xb1   :  { %1488 = vmatmul.msk.f32.gmra.mxu3 %vm57_vm0, %v1486_v61 }
  0xb2   :  { %712 = vmatpush.msra.mxu3 %v1940_v36  ;;  %698 = vmatpush.msra.mxu2 %v1982_v42 }
  0xb4   :  { %713 = vmatpush.msra.mxu3 %v1947_v37 }
  0xb6   :  { %714 = vmatpush.msra.mxu3 %v1953_v38 }
  0xb8   :  { %715 = vmatpush.msra.mxu3 %v1961_v39 }
  0xba   :  { %716 = vmatpush.msra.mxu3 %v1968_v40 }
  0xbc   :  { %717 = vmatpush.msra.mxu3 %v1975_v41 }
  0xbe   :  { %718 = vmatpush.msra.mxu3 %v1982_v42 }
 0x115   :  { %v224_v62 = vpop.f32.mrf.mxu0 }
 0x116   :  { %1459 = vmatmul.msk.f32.vlgmr.msrb.gmra.mxu1 %vm238_vm1, %v224_v62 }
 0x11c   :  { %v323_v63 = vpop.f32.mrf.mxu3 }
 0x11d   :  { %1475 = vmatmul.msk.f32.vlgmr.msra.gmra.mxu0 %vm238_vm1, %v323_v63  ;;  %v227_v0 = vpop.f32.mrf.mxu0 }
 0x11e   :  { %1460 = vmatmul.msk.f32.gmra.mxu1 %vm238_vm1, %v227_v0  ;;  %508 = vmatpush.msra.mxu0 %v1642_v2  ;;  %v1489_v2 = vld [vmem:[%s2660_s0 + $0x70] sm:$0xff] }
 0x120   :  { %509 = vmatpush.msra.mxu0 %v1661_v6  ;;  %v291_v6 = vpop.f32.mrf.mxu2 }
 0x124   :  { %v326_v3 = vpop.f32.mrf.mxu3 }
 0x125   :  { %1476 = vmatmul.msk.f32.gmra.mxu0 %vm238_vm1, %v326_v3 }
 0x126   :  { %1482 = vmatmul.msk.f32.vlgmr.msra.gmra.mxu1 %vm57_vm0, %v1480_v1 }
 0x128   :  { %v294_v10 = vpop.f32.mrf.mxu2 }
 0x12c   :  { %v477_v18 = vpop.f32.mrf.mxu3 }
 0x12d   :  { %1481 = vmatmul.msk.f32.vlgmr.msrb.gmra.mxu0 %vm57_vm0, %v1479_v4 }
 0x130   :  { %v445_v16 = vpop.f32.mrf.mxu2 }
 0x134   :  { %v480_v26 = vpop.f32.mrf.mxu3 }
 0x135   :  { %1491 = vmatmul.msk.f32.vlgmr.msra.gmra.mxu0 %vm57_vm0, %v1489_v2 }
 0x138   :  { %v448_v21 = vpop.f32.mrf.mxu2 }
 0x13d   :  { %1492 = vmatmul.msk.f32.gmra.mxu0 %vm57_vm0, %v1490_v5 }
 0x193   :  { %v262_v7 = vpop.f32.mrf.mxu1 }
 0x194   :  { %v292_v8 = vadd.f32 %v291_v6, %v262_v7 }
 0x19a   :  { %v361_v9 = vpop.f32.mrf.mxu0 }
 0x19b   :  { %v1897_v11 = vadd.f32 %v361_v9, %v292_v8  ;;  %v265_v12 = vpop.f32.mrf.mxu1 }
 0x19c   :  { %v295_v13 = vadd.f32 %v294_v10, %v265_v12 }
 0x19d   :  { %v377_v58 = vmul.f32 %v1897_v11, %v1897_v11 }
 0x1a2   :  { %v364_v14 = vpop.f32.mrf.mxu0 }
 0x1a3   :  { %v1899_v15 = vadd.f32 %v364_v14, %v295_v13  ;;  %v419_v20 = vpop.f32.mrf.mxu1 }
 0x1a4   :  { %v449_v25 = vadd.f32 %v448_v21, %v419_v20 }
 0x1a5   :  { %v369_v59 = vadd.f32 %v1899_v15, %v1897_v11 }
 0x1a6   :  { %v484_v27 = vadd.f32 %v480_v26, %v449_v25 }
 0x1a7   :  { %v370_v61 = vrot.slane %v369_v59, 4 }
 0x1a9   :  { %v371_v4 = vadd.f32 %v370_v61, %v369_v59  ;;  %v2072_v59 = vld [vmem:[%s2664_s4 + $0xe0] sm:$0xff]  ;;  %v2084_v61 = vld [vmem:[%s2664_s4 + $0xd0] sm:$0xff] }
 0x1aa   :  { %v416_v17 = vpop.f32.mrf.mxu0 }
 0x1ab   :  { %v446_v19 = vadd.f32 %v445_v16, %v416_v17  ;;  %v372_v8 = vrot.slane %v371_v4, 2 }
 0x1ad   :  { %v483_v22 = vadd.f32 %v477_v18, %v446_v19  ;;  %v373_v17 = vadd.f32 %v372_v8, %v371_v4  ;;  %v2120_v4 = vld [vmem:[%s2664_s4 + $0xa0] sm:$0xff]  ;;  %v2131_v8 = vld [vmem:[%s2664_s4 + $0x90] sm:$0xff] }
 0x1b2   :  { %v511_v23 = vpop.f32.mrf.mxu0 }
 0x1b3   :  { %v517_v24 = vadd.f32 %v511_v23, %v483_v22  ;;  %v374_v23 = vrot.slane %v373_v17, 1 }
 0x1b5   :  { %1497 = vmatmul.msk.f32.vlgmr.msrb.gmra.mxu3 %vm238_vm1, %v517_v24 }
 0x1ba   :  { %v514_v28 = vpop.f32.mrf.mxu0 }
 0x1bb   :  { %v518_v29 = vadd.f32 %v514_v28, %v484_v27 }
 0x1bd   :  { %533 = vmatpush.msrb.mxu1 %v518_v29  ;;  %1498 = vmatmul.msk.f32.gmra.mxu3 %vm238_vm1, %v518_v29 }
 0x1be   :  { %614 = vmatpush.msrb.mxu0 %v518_v29  ;;  %v375_v29 = vadd.f32 %v374_v23, %v373_v17 }
 0x1bf   :  { %534 = vmatpush.msrb.mxu1 %v517_v24 }
 0x1c0   :  { %615 = vmatpush.msrb.mxu0 %v517_v24  ;;  %1493 = vmatmul.msk.f32.vlgmr.msrb.gmra.mxu1 %vm57_vm0, %v1765_v43 }
 0x1c1   :  { %1499 = vmatmul.msk.f32.vlgmr.msrb.gmra.mxu0 %vm57_vm0, %v1770_v44  ;;  %637 = vmatpush.msra.mxu1 %v1775_v45  ;;  %v1989_v45 = vld [vmem:[%s2663_s5 + $0x30] sm:$0xff] }
 0x1c2   :  { %699 = vmatpush.msra.mxu2 %v1989_v45  ;;  %719 = vmatpush.msra.mxu3 %v1989_v45 }
 0x1c3   :  { %638 = vmatpush.msra.mxu1 %v1782_v46  ;;  %v1996_v46 = vld [vmem:[%s2663_s5 + $0x28] sm:$0xff] }
 0x1c4   :  { %700 = vmatpush.msra.mxu2 %v1996_v46  ;;  %720 = vmatpush.msra.mxu3 %v1996_v46 }
 0x1c5   :  { %639 = vmatpush.msra.mxu1 %v1816_v50  ;;  %v2010_v50 = vld [vmem:[%s2663_s5 + $0x18] sm:$0xff] }
 0x1c6   :  { %701 = vmatpush.msra.mxu2 %v2003_v49  ;;  %721 = vmatpush.msra.mxu3 %v2003_v49 }
 0x1c7   :  { %640 = vmatpush.msra.mxu1 %v1825_v52  ;;  %v2022_v52 = vld [vmem:[%s2663_s5 + $0x8] sm:$0xff] }
 0x1c8   :  { %1494 = vmatmul.msk.f32.gmra.mxu1 %vm57_vm0, %v1793_v47  ;;  %702 = vmatpush.msra.mxu2 %v2010_v50 }
 0x1c9   :  { %1500 = vmatmul.msk.f32.gmra.mxu0 %vm57_vm0, %v1799_v48  ;;  %641 = vmatpush.msra.mxu1 %v1834_v54 }
 0x1ca   :  { %722 = vmatpush.msra.mxu3 %v2010_v50  ;;  %703 = vmatpush.msra.mxu2 %v2016_v51 }
 0x1cb   :  { %642 = vmatpush.msra.mxu1 %v1840_v55 }
 0x1cc   :  { %723 = vmatpush.msra.mxu3 %v2016_v51  ;;  %704 = vmatpush.msra.mxu2 %v2022_v52 }
 0x1cd   :  { %643 = vmatpush.msra.mxu1 %v1847_v56  ;;  %v378_v56 = vmul.f32 %v1899_v15, %v1899_v15 }
 0x1ce   :  { %724 = vmatpush.msra.mxu3 %v2022_v52  ;;  %705 = vmatpush.msra.mxu2 %v2029_v53 }
 0x1cf   :  { %644 = vmatpush.msra.mxu1 %v1854_v57  ;;  %v379_v60 = vadd.f32 %v378_v56, %v377_v58  ;;  %v2054_v56 = vld [vmem:[%s2664_s4 + $0xf8] sm:$0xff]  ;;  %v2066_v58 = vld [vmem:[%s2664_s4 + $0xe8] sm:$0xff] }
 0x1d0   :  { %725 = vmatpush.msra.mxu3 %v2029_v53  ;;  %839 = vmatpush.msra.mxu0 %v2054_v56 }
 0x1d1   :  { %v380_v63 = vrot.slane %v379_v60, 4 }
 0x1d3   :  { %v381_v6 = vadd.f32 %v380_v63, %v379_v60  ;;  %v2078_v60 = vld [vmem:[%s2664_s4 + $0xd8] sm:$0xff]  ;;  %v2096_v63 = vld [vmem:[%s2664_s4 + $0xc0] sm:$0xff] }
 0x1d5   :  { %v382_v13 = vrot.slane %v381_v6, 2 }
 0x1d7   :  { %v383_v20 = vadd.f32 %v382_v13, %v381_v6 }
 0x1d9   :  { %v384_v28 = vrot.slane %v383_v20, 1 }
 0x238   :  { %v594_v54 = vpop.f32.mrf.mxu3 }
 0x23d   :  { %v536_v31 = vpop.f32.mrf.mxu1 }
 0x23e   :  { %1495 = vmatmul.msk.f32.vlgmr.msrb.gmra.mxu2 %vm238_vm1, %v536_v31  ;;  %v617_v32 = vpop.f32.mrf.mxu0 }
 0x23f   :  { %1501 = vmatmul.msk.f32.vlgmr.msra.gmra.mxu1 %vm238_vm1, %v617_v32 }
 0x240   :  { %v597_v0 = vpop.f32.mrf.mxu3 }
 0x245   :  { %v539_v33 = vpop.f32.mrf.mxu1 }
 0x246   :  { %1496 = vmatmul.msk.f32.gmra.mxu2 %vm238_vm1, %v539_v33  ;;  %v620_v34 = vpop.f32.mrf.mxu0 }
 0x247   :  { %1502 = vmatmul.msk.f32.gmra.mxu1 %vm238_vm1, %v620_v34  ;;  %v385_v34 = vadd.f32 %v384_v28, %v383_v20  ;;  %v673_v28 = vld [vmem:[%s2666_s11] sm:$0x1] }
 0x2bc   :  { %v646_v55 = vpop.f32.mrf.mxu1 }
 0x2c1   :  { %v565_v57 = vpop.f32.mrf.mxu2 }
 0x2c2   :  { %v595_v62 = vadd.f32 %v594_v54, %v565_v57  ;;  %v2060_v57 = vld [vmem:[%s2664_s4 + $0xf0] sm:$0xff] }
 0x2c3   :  { %840 = vmatpush.msra.mxu0 %v2060_v57 }
 0x2c4   :  { %v649_v3 = vpop.f32.mrf.mxu1  ;;  %v2041_v2 = vadd.f32 %v646_v55, %v595_v62  ;;  %v2090_v62 = vld [vmem:[%s2664_s4 + $0xc8] sm:$0xff] }
 0x2c5   :  { %841 = vmatpush.msra.mxu0 %v2066_v58 }
 0x2c6   :  { %v662_v9 = vmul.f32 %v2041_v2, %v2041_v2 }
 0x2c7   :  { %842 = vmatpush.msra.mxu0 %v2072_v59 }
 0x2c9   :  { %v568_v1 = vpop.f32.mrf.mxu2  ;;  %843 = vmatpush.msra.mxu0 %v2078_v60 }
 0x2ca   :  { %v598_v5 = vadd.f32 %v597_v0, %v568_v1  ;;  %v2102_v0 = vld [vmem:[%s2664_s4 + $0xb8] sm:$0xff]  ;;  %v2108_v1 = vld [vmem:[%s2664_s4 + $0xb0] sm:$0xff] }
 0x2cb   :  { %844 = vmatpush.msra.mxu0 %v2084_v61 }
 0x2cc   :  { %v2043_v7 = vadd.f32 %v649_v3, %v598_v5  ;;  %v2114_v3 = vld [vmem:[%s2664_s4 + $0xa8] sm:$0xff]  ;;  %v2126_v5 = vld [vmem:[%s2664_s4 + $0x98] sm:$0xff] }
 0x2cd   :  { %845 = vmatpush.msra.mxu0 %v2090_v62 }
 0x2ce   :  { %v654_v10 = vadd.f32 %v2043_v7, %v2041_v2  ;;  %v663_v12 = vmul.f32 %v2043_v7, %v2043_v7 }
 0x2cf   :  { %846 = vmatpush.msra.mxu0 %v2096_v63 }
 0x2d0   :  { %v655_v14 = vrot.slane %v654_v10, 4  ;;  %v664_v16 = vadd.f32 %v663_v12, %v662_v9  ;;  %v2137_v12 = vld [vmem:[%s2664_s4 + $0x88] sm:$0xff] }
 0x2d1   :  { %847 = vmatpush.msra.mxu0 %v2102_v0 }
 0x2d2   :  { %v656_v18 = vadd.f32 %v655_v14, %v654_v10  ;;  %v665_v19 = vrot.slane %v664_v16, 4 }
 0x2d3   :  { %848 = vmatpush.msra.mxu0 %v2108_v1 }
 0x2d4   :  { %v657_v21 = vrot.slane %v656_v18, 2  ;;  %v666_v22 = vadd.f32 %v665_v19, %v664_v16  ;;  %v2143_v16 = vld [vmem:[%s2664_s4 + $0x80] sm:$0xff] }
 0x2d5   :  { %849 = vmatpush.msra.mxu0 %v2114_v3 }
 0x2d6   :  { %v658_v24 = vadd.f32 %v657_v21, %v656_v18  ;;  %v667_v25 = vrot.slane %v666_v22, 2 }
 0x2d7   :  { %850 = vmatpush.msra.mxu0 %v2120_v4 }
 0x2d8   :  { %v659_v26 = vrot.slane %v658_v24, 1  ;;  %v668_v27 = vadd.f32 %v667_v25, %v666_v22 }
 0x2d9   :  { %851 = vmatpush.msra.mxu0 %v2126_v5 }
 0x2da   :  { %v660_v31 = vadd.f32 %v659_v26, %v658_v24  ;;  %v669_v32 = vrot.slane %v668_v27, 1  ;;  %v672_v24 = vld [vmem:[%s2665_s10] sm:$0x1] }
 0x2db   :  { %852 = vmatpush.msra.mxu0 %v2131_v8 }
 0x2dc   :  { %v661_v33 = vadd.f32 %v660_v31, %v375_v29  ;;  %v670_v54 = vadd.f32 %v669_v32, %v668_v27 }
 0x2dd   :  { %853 = vmatpush.msra.mxu0 %v2137_v12 }
 0x2de   :  { %706 = vmatmul.f32.vlgmr.msra.gmra.mxu2 %v661_v33  ;;  %v671_v55 = vadd.f32 %v670_v54, %v385_v34 }
 0x2df   :  { %854 = vmatpush.msra.mxu0 %v2143_v16 }
 0x2e0   :  { %726 = vmatmul.f32.vlgmr.msra.gmra.mxu3 %v671_v55 }
 0x361   :  { %v707_v6 = vpop.f32.mrf.mxu2 }
 0x362   :  { %v730_v9 = vmul.f32 0.001953125, %v707_v6 }
 0x363   :  { %v727_v10 = vpop.f32.mrf.mxu3 }
 0x364   :  { %v732_v13 = vmul.f32 %v730_v9, %v730_v9  ;;  %v731_v14 = vmul.f32 0.001953125, %v727_v10 }
 0x366   :  { %v733_v17 = vsub.f32 %v731_v14, %v732_v13 }
 0x368   :  { %v734_v18 = vadd.f32 1e-05, %v733_v17 }
 0x36a   :  { %1550 = vrsqrt.f32 %v734_v18  ;;  %vm741_vm3 = vweird.f32 %v734_v18 }
 0x370   :  { %v1551_v19 = vpop.eup %1550 }
 0x371   :  { %v736_v20 = vmul.f32 %v1551_v19, %v734_v18  ;;  %vm742_vm2 = vweird.f32 %v1551_v19 }
 0x372   :  { %vm743_vm4 = vmor %vm741_vm3, %vm742_vm2 }
 0x373   :  { %v737_v21 = vmul.f32 %v1551_v19, %v736_v20 }
 0x375   :  { %v738_v22 = vmul.f32 0.5, %v737_v21  ;;  %v1528_v21 = vld [vmem:[%s2664_s4 + $0x128] sm:$0xff] }
 0x377   :  { %v739_v23 = vsub.f32 1.5, %v738_v22  ;;  %v1527_v22 = vld [vmem:[%s2664_s4 + $0x120] sm:$0xff] }
 0x379   :  { %v740_v25 = vmul.f32 %v1551_v19, %v739_v23  ;;  %v1526_v23 = vld [vmem:[%s2664_s4 + $0x118] sm:$0xff] }
 0x37b   :  { %v744_v26 = vsel %vm743_vm4, %v1551_v19, %v740_v25  ;;  %v801_v25 = vld [vmem:[%s2664_s4 + $0x8] sm:$0xff] }
 0x37c   :  { %v745_v27 = vmul.f32 %v744_v26, %v672_v24  ;;  %v1525_v24 = vld [vmem:[%s2664_s4 + $0x110] sm:$0xff]  ;;  %v1524_v26 = vld [vmem:[%s2664_s4 + $0x108] sm:$0xff] }
 0x37e   :  { %v746_v29 = vmul.f32 %v745_v27, %v730_v9  ;;  %v749_v31 = vperm.slane %v745_v27, 0  ;;  %v805_v9 = vld [vmem:[%s2664_s4 + $0x28] sm:$0xff]  ;;  %v800_v27 = vld [vmem:[%s2664_s4] sm:$0xff] }
 0x380   :  { %v747_v32 = vsub.f32 %v673_v28, %v746_v29  ;;  %v752_v33 = vmul.f32 %v749_v31, %v1899_v15  ;;  %v751_v54 = vmul.f32 %v749_v31, %v1897_v11  ;;  %v946_v55 = vmul.f32 %v749_v31, %v2043_v7  ;;  %v2185_v11 = vld [vmem:[%s2664_s4 + $0x78] sm:$0xff]  ;;  %v2199_v7 = vld [vmem:[%s2664_s4 + $0x70] sm:$0xff]  ;;  %v1523_v28 = vld [vmem:[%s2664_s4 + $0x100] sm:$0xff] }
 0x381   :  { %v945_v6 = vmul.f32 %v749_v31, %v2041_v2  ;;  %v2190_v2 = vld [vmem:[%s2664_s4 + $0x178] sm:$0xff]  ;;  %816 = vmatpush.msrb.mxu1 %v2185_v11 }
 0x382   :  { %v754_v34 = vperm.slane %v747_v32, 0 }
 0x383   :  { %817 = vmatpush.msrb.mxu1 %v2199_v7 }
 0x384   :  { %v757_v10 = vadd.f32 %v754_v34, %v752_v33  ;;  %v756_v13 = vadd.f32 %v754_v34, %v751_v54  ;;  %v948_v14 = vadd.f32 %v946_v55, %v754_v34  ;;  %v947_v17 = vadd.f32 %v945_v6, %v754_v34 }
 0x386   :  { %v759_v18 = vmax.f32 %v757_v10, 0.0  ;;  %v758_v19 = vmax.f32 %v756_v13, 0.0  ;;  %v2157_v20 = vmax.f32 %v948_v14, 0.0  ;;  %v2160_v15 = vmax.f32 %v947_v17, 0.0 }
 0x388   :  { %791 = vmatpush.msrb.mxu3 %v759_v18  ;;  %855 = vmatmul.f32.vlgmr.msra.gmra.mxu0 %v758_v19 }
 0x389   :  { %876 = vmatpush.msrb.mxu2 %v759_v18  ;;  %1034 = vmatpush.msrb.mxu0 %v2157_v20 }
 0x38a   :  { %792 = vmatpush.msrb.mxu3 %v758_v19 }
 0x38b   :  { %877 = vmatpush.msrb.mxu2 %v758_v19  ;;  %1035 = vmatpush.msrb.mxu0 %v2160_v15 }
 0x38c   :  { %1519 = vmatmul.msk.f32.vlgmr.msrb.gmra.mxu3 %vm57_vm0, %v1765_v43  ;;  %1521 = vmatmul.msk.f32.vlgmr.msrb.gmra.mxu2 %vm57_vm0, %v1770_v44 }
 0x38d   :  { %965 = vmatpush.msra.mxu2 %v2157_v20  ;;  %1088 = vmatpush.msra.mxu0 %v1922_v30 }
 0x38e   :  { %902 = vmatpush.msra.mxu3 %v2190_v2 }
 0x38f   :  { %966 = vmatpush.msra.mxu2 %v2160_v15  ;;  %1089 = vmatpush.msra.mxu0 %v1933_v35 }
 0x390   :  { %858 = vmatmul.f32.gmra.mxu0 %v759_v18 }
 0x391   :  { %997 = vmatpush.msrb.mxu2 %v2054_v56  ;;  %1090 = vmatpush.msra.mxu0 %v1940_v36  ;;  %v2204_v56 = vld [vmem:[%s2664_s4 + $0x170] sm:$0xff] }
 0x392   :  { %903 = vmatpush.msra.mxu3 %v2204_v56 }
 0x393   :  { %998 = vmatpush.msrb.mxu2 %v2060_v57  ;;  %1091 = vmatpush.msra.mxu0 %v1947_v37  ;;  %v2220_v57 = vld [vmem:[%s2664_s4 + $0x168] sm:$0xff] }
 0x394   :  { %1520 = vmatmul.msk.f32.gmra.mxu3 %vm57_vm0, %v1793_v47  ;;  %1522 = vmatmul.msk.f32.gmra.mxu2 %vm57_vm0, %v1799_v48 }
 0x395   :  { %999 = vmatpush.msrb.mxu2 %v2066_v58  ;;  %1092 = vmatpush.msra.mxu0 %v1953_v38  ;;  %v2226_v58 = vld [vmem:[%s2664_s4 + $0x60] sm:$0xff] }
 0x396   :  { %904 = vmatpush.msra.mxu3 %v2220_v57 }
 0x397   :  { %1000 = vmatpush.msrb.mxu2 %v2072_v59  ;;  %1093 = vmatpush.msra.mxu0 %v1961_v39  ;;  %v2237_v59 = vld [vmem:[%s2664_s4 + $0x160] sm:$0xff] }
 0x398   :  { %1541 = vmatmul.msk.f32.vlgmr.msrb.gmra.mxu0 %vm57_vm0, %v1770_v44  ;;  %v2212_v44 = vld [vmem:[%s2664_s4 + $0x68] sm:$0xff]  ;;  %905 = vmatpush.msra.mxu3 %v2237_v59 }
 0x399   :  { %1001 = vmatpush.msrb.mxu2 %v2078_v60  ;;  %1094 = vmatpush.msra.mxu0 %v1968_v40  ;;  %v2242_v60 = vld [vmem:[%s2664_s4 + $0x58] sm:$0xff] }
 0x39a   :  { %818 = vmatpush.msrb.mxu1 %v2212_v44 }
 0x39b   :  { %1002 = vmatpush.msrb.mxu2 %v2084_v61  ;;  %1095 = vmatpush.msra.mxu0 %v1975_v41  ;;  %v2257_v61 = vld [vmem:[%s2664_s4 + $0x50] sm:$0xff] }
 0x39c   :  { %1539 = vmatmul.msk.f32.vlgmr.msra.gmra.mxu2 %vm57_vm0, %v1765_v43  ;;  %819 = vmatpush.msrb.mxu1 %v2226_v58  ;;  %v2252_v43 = vld [vmem:[%s2664_s4 + $0x158] sm:$0xff] }
 0x39d   :  { %1003 = vmatpush.msrb.mxu2 %v2090_v62  ;;  %1096 = vmatpush.msra.mxu0 %v1982_v42  ;;  %v2273_v62 = vld [vmem:[%s2664_s4 + $0x48] sm:$0xff] }
 0x39e   :  { %820 = vmatpush.msrb.mxu1 %v2242_v60  ;;  %906 = vmatpush.msra.mxu3 %v2252_v43 }
 0x39f   :  { %1004 = vmatpush.msrb.mxu2 %v2096_v63  ;;  %1097 = vmatpush.msra.mxu0 %v1989_v45  ;;  %v2279_v63 = vld [vmem:[%s2664_s4 + $0x148] sm:$0xff] }
 0x3a0   :  { %1542 = vmatmul.msk.f32.gmra.mxu0 %vm57_vm0, %v1799_v48  ;;  %v2265_v48 = vld [vmem:[%s2664_s4 + $0x150] sm:$0xff]  ;;  %821 = vmatpush.msrb.mxu1 %v2257_v61 }
 0x3a1   :  { %1005 = vmatpush.msrb.mxu2 %v2102_v0  ;;  %1098 = vmatpush.msra.mxu0 %v1996_v46  ;;  %v2288_v0 = vld [vmem:[%s2664_s4 + $0x40] sm:$0xff] }
 0x3a2   :  { %907 = vmatpush.msra.mxu3 %v2265_v48  ;;  %822 = vmatpush.msrb.mxu1 %v2273_v62 }
 0x3a3   :  { %1006 = vmatpush.msrb.mxu2 %v2108_v1  ;;  %v1531_v1 = vld [vmem:[%s2664_s4 + $0x140] sm:$0xff]  ;;  %1099 = vmatpush.msra.mxu0 %v2003_v49 }
 0x3a4   :  { %1540 = vmatmul.msk.f32.gmra.mxu2 %vm57_vm0, %v1793_v47  ;;  %908 = vmatpush.msra.mxu3 %v2279_v63  ;;  %v807_v47 = vld [vmem:[%s2664_s4 + $0x38] sm:$0xff] }
 0x3a5   :  { %1007 = vmatpush.msrb.mxu2 %v2114_v3  ;;  %823 = vmatpush.msrb.mxu1 %v2288_v0  ;;  %v1530_v3 = vld [vmem:[%s2664_s4 + $0x138] sm:$0xff] }
 0x3a6   :  { %909 = vmatpush.msra.mxu3 %v1531_v1  ;;  %1100 = vmatpush.msra.mxu0 %v2010_v50 }
 0x3a7   :  { %1008 = vmatpush.msrb.mxu2 %v2120_v4  ;;  %v806_v4 = vld [vmem:[%s2664_s4 + $0x30] sm:$0xff]  ;;  %824 = vmatpush.msrb.mxu1 %v807_v47 }
 0x3a8   :  { %910 = vmatpush.msra.mxu3 %v1530_v3  ;;  %1101 = vmatpush.msra.mxu0 %v2016_v51 }
 0x3a9   :  { %1009 = vmatpush.msrb.mxu2 %v2126_v5  ;;  %v1529_v5 = vld [vmem:[%s2664_s4 + $0x130] sm:$0xff]  ;;  %825 = vmatpush.msrb.mxu1 %v806_v4 }
 0x3aa   :  { %911 = vmatpush.msra.mxu3 %v1529_v5  ;;  %1102 = vmatpush.msra.mxu0 %v2022_v52 }
 0x3ab   :  { %1010 = vmatpush.msrb.mxu2 %v2131_v8  ;;  %v804_v8 = vld [vmem:[%s2664_s4 + $0x20] sm:$0xff]  ;;  %826 = vmatpush.msrb.mxu1 %v805_v9 }
 0x3ac   :  { %912 = vmatpush.msra.mxu3 %v1528_v21  ;;  %1103 = vmatpush.msra.mxu0 %v2029_v53 }
 0x3ad   :  { %1011 = vmatpush.msrb.mxu2 %v2137_v12  ;;  %v803_v12 = vld [vmem:[%s2664_s4 + $0x18] sm:$0xff]  ;;  %827 = vmatpush.msrb.mxu1 %v804_v8 }
 0x3ae   :  { %913 = vmatpush.msra.mxu3 %v1527_v22 }
 0x3af   :  { %1012 = vmatpush.msrb.mxu2 %v2143_v16  ;;  %v802_v16 = vld [vmem:[%s2664_s4 + $0x10] sm:$0xff]  ;;  %828 = vmatpush.msrb.mxu1 %v803_v12 }
 0x3b0   :  { %1013 = vmatmul.f32.vlgmr.msrb.gmra.mxu2 %v2160_v15  ;;  %914 = vmatpush.msra.mxu3 %v1526_v23 }
 0x3b1   :  { %829 = vmatpush.msrb.mxu1 %v802_v16 }
 0x3b2   :  { %915 = vmatpush.msra.mxu3 %v1525_v24 }
 0x3b3   :  { %830 = vmatpush.msrb.mxu1 %v801_v25 }
 0x3b4   :  { %916 = vmatpush.msra.mxu3 %v1524_v26 }
 0x3b5   :  { %831 = vmatpush.msrb.mxu1 %v800_v27 }
 0x3b6   :  { %917 = vmatpush.msra.mxu3 %v1523_v28 }
 0x3b7   :  { %974 = vmatpush.msra.mxu1 %v2185_v11 }
 0x3b8   :  { %1016 = vmatmul.f32.gmra.mxu2 %v2157_v20  ;;  %1043 = vmatpush.msrb.mxu3 %v2190_v2 }
 0x3b9   :  { %975 = vmatpush.msra.mxu1 %v2199_v7 }
 0x3ba   :  { %1044 = vmatpush.msrb.mxu3 %v2204_v56 }
 0x3bb   :  { %976 = vmatpush.msra.mxu1 %v2212_v44 }
 0x3bc   :  { %1045 = vmatpush.msrb.mxu3 %v2220_v57 }
 0x3bd   :  { %977 = vmatpush.msra.mxu1 %v2226_v58 }
 0x3be   :  { %1046 = vmatpush.msrb.mxu3 %v2237_v59 }
 0x3bf   :  { %978 = vmatpush.msra.mxu1 %v2242_v60 }
 0x3c0   :  { %1047 = vmatpush.msrb.mxu3 %v2252_v43 }
 0x3c1   :  { %979 = vmatpush.msra.mxu1 %v2257_v61 }
 0x3c2   :  { %1048 = vmatpush.msrb.mxu3 %v2265_v48 }
 0x3c3   :  { %980 = vmatpush.msra.mxu1 %v2273_v62 }
 0x3c4   :  { %1049 = vmatpush.msrb.mxu3 %v2279_v63 }
 0x3c5   :  { %981 = vmatpush.msra.mxu1 %v2288_v0 }
 0x3c6   :  { %1050 = vmatpush.msrb.mxu3 %v1531_v1 }
 0x3c7   :  { %982 = vmatpush.msra.mxu1 %v807_v47 }
 0x3c8   :  { %1051 = vmatpush.msrb.mxu3 %v1530_v3 }
 0x3c9   :  { %983 = vmatpush.msra.mxu1 %v806_v4 }
 0x3ca   :  { %1052 = vmatpush.msrb.mxu3 %v1529_v5 }
 0x3cb   :  { %984 = vmatpush.msra.mxu1 %v805_v9 }
 0x3cc   :  { %1053 = vmatpush.msrb.mxu3 %v1528_v21 }
 0x3cd   :  { %985 = vmatpush.msra.mxu1 %v804_v8 }
 0x3ce   :  { %1054 = vmatpush.msrb.mxu3 %v1527_v22 }
 0x3cf   :  { %986 = vmatpush.msra.mxu1 %v803_v12 }
 0x3d0   :  { %1055 = vmatpush.msrb.mxu3 %v1526_v23 }
 0x3d1   :  { %987 = vmatpush.msra.mxu1 %v802_v16 }
 0x3d2   :  { %1056 = vmatpush.msrb.mxu3 %v1525_v24 }
 0x3d3   :  { %988 = vmatpush.msra.mxu1 %v801_v25 }
 0x3d4   :  { %1057 = vmatpush.msrb.mxu3 %v1524_v26 }
 0x3d5   :  { %989 = vmatpush.msra.mxu1 %v800_v27  ;;  %v2410_v27 = vld [vmem:[%s2667_s6 + $0x78] sm:$0xff] }
 0x3d6   :  { %1058 = vmatpush.msrb.mxu3 %v1523_v28  ;;  %v2415_v28 = vld [vmem:[%s2668_s7 + $0x78] sm:$0xff]  ;;  %1174 = vmatpush.msra.mxu2 %v2410_v27 }
 0x405   :  { %v856_v29 = vpop.f32.mrf.mxu0 }
 0x40d   :  { %v859_v33 = vpop.f32.mrf.mxu0 }
 0x40f   :  { %v794_v31 = vpop.f32.mrf.mxu3  ;;  %v879_v32 = vpop.f32.mrf.mxu2 }
 0x410   :  { %832 = vmatmul.f32.vlgmr.msrb.gmra.mxu1 %v794_v31  ;;  %918 = vmatmul.f32.vlgmr.msra.gmra.mxu3 %v879_v32  ;;  %v2427_v31 = vld [vmem:[%s2668_s7 + $0x70] sm:$0xff]  ;;  %v2434_v32 = vld [vmem:[%s2667_s6 + $0x68] sm:$0xff] }
 0x411   :  { %1108 = vmatpush.msrb.mxu1 %v1922_v30  ;;  %1213 = vmatpush.msra.mxu3 %v2415_v28 }
 0x413   :  { %1109 = vmatpush.msrb.mxu1 %v1933_v35  ;;  %1214 = vmatpush.msra.mxu3 %v2427_v31 }
 0x415   :  { %1110 = vmatpush.msrb.mxu1 %v1940_v36  ;;  %v1037_v55 = vpop.f32.mrf.mxu0 }
 0x417   :  { %v797_v34 = vpop.f32.mrf.mxu3  ;;  %1111 = vmatpush.msrb.mxu1 %v1947_v37  ;;  %v882_v54 = vpop.f32.mrf.mxu2 }
 0x418   :  { %835 = vmatmul.f32.gmra.mxu1 %v797_v34  ;;  %921 = vmatmul.f32.gmra.mxu3 %v882_v54  ;;  %v2446_v34 = vld [vmem:[%s2667_s6 + $0x60] sm:$0xff] }
 0x419   :  { %1112 = vmatpush.msrb.mxu1 %v1953_v38  ;;  %v2451_v54 = vld [vmem:[%s2668_s7 + $0x60] sm:$0xff] }
 0x41b   :  { %1113 = vmatpush.msrb.mxu1 %v1961_v39 }
 0x41d   :  { %1114 = vmatpush.msrb.mxu1 %v1968_v40  ;;  %v1040_v35 = vpop.f32.mrf.mxu0 }
 0x41f   :  { %1115 = vmatpush.msrb.mxu1 %v1975_v41  ;;  %v968_v30 = vpop.f32.mrf.mxu2 }
 0x420   :  { %990 = vmatmul.f32.vlgmr.msra.gmra.mxu1 %v968_v30  ;;  %1059 = vmatmul.f32.vlgmr.msrb.gmra.mxu3 %v1037_v55  ;;  %v2458_v55 = vld [vmem:[%s2667_s6 + $0x58] sm:$0xff] }
 0x421   :  { %1116 = vmatpush.msrb.mxu1 %v1982_v42  ;;  %v2463_v30 = vld [vmem:[%s2668_s7 + $0x58] sm:$0xff] }
 0x423   :  { %1117 = vmatpush.msrb.mxu1 %v1989_v45 }
 0x425   :  { %1118 = vmatpush.msrb.mxu1 %v1996_v46 }
 0x427   :  { %v971_v36 = vpop.f32.mrf.mxu2  ;;  %1119 = vmatpush.msrb.mxu1 %v2003_v49 }
 0x428   :  { %993 = vmatmul.f32.gmra.mxu1 %v971_v36  ;;  %1062 = vmatmul.f32.gmra.mxu3 %v1040_v35  ;;  %v2470_v35 = vld [vmem:[%s2667_s6 + $0x50] sm:$0xff] }
 0x429   :  { %1120 = vmatpush.msrb.mxu1 %v2010_v50  ;;  %v2475_v36 = vld [vmem:[%s2668_s7 + $0x50] sm:$0xff] }
 0x42b   :  { %1121 = vmatpush.msrb.mxu1 %v2016_v51 }
 0x42d   :  { %1122 = vmatpush.msrb.mxu1 %v2022_v52 }
 0x42f   :  { %1123 = vmatpush.msrb.mxu1 %v2029_v53 }
 0x433   :  { %v1014_v6 = vpop.f32.mrf.mxu2 }
 0x43b   :  { %v1017_v19 = vpop.f32.mrf.mxu2 }
 0x48d   :  { %v833_v37 = vpop.f32.mrf.mxu1 }
 0x48e   :  { %v857_v42 = vadd.f32 %v856_v29, %v833_v37  ;;  %v2422_v29 = vld [vmem:[%s2667_s6 + $0x70] sm:$0xff]  ;;  %v2482_v37 = vld [vmem:[%s2667_s6 + $0x48] sm:$0xff] }
 0x48f   :  { %1175 = vmatpush.msra.mxu2 %v2422_v29 }
 0x491   :  { %1176 = vmatpush.msra.mxu2 %v2434_v32 }
 0x493   :  { %v919_v38 = vpop.f32.mrf.mxu3  ;;  %1177 = vmatpush.msra.mxu2 %v2446_v34 }
 0x494   :  { %v2389_v49 = vadd.f32 %v919_v38, %v857_v42  ;;  %v2487_v38 = vld [vmem:[%s2668_s7 + $0x48] sm:$0xff]  ;;  %v2511_v42 = vld [vmem:[%s2668_s7 + $0x38] sm:$0xff] }
 0x495   :  { %v836_v39 = vpop.f32.mrf.mxu1  ;;  %1178 = vmatpush.msra.mxu2 %v2458_v55 }
 0x496   :  { %v860_v40 = vadd.f32 %v859_v33, %v836_v39  ;;  %v935_v51 = vmul.f32 %v2389_v49, %v2389_v49  ;;  %v2439_v33 = vld [vmem:[%s2668_s7 + $0x68] sm:$0xff]  ;;  %v2494_v39 = vld [vmem:[%s2667_s6 + $0x40] sm:$0xff] }
 0x497   :  { %1215 = vmatpush.msra.mxu3 %v2439_v33  ;;  %1179 = vmatpush.msra.mxu2 %v2470_v35 }
 0x499   :  { %1216 = vmatpush.msra.mxu3 %v2451_v54  ;;  %1180 = vmatpush.msra.mxu2 %v2482_v37 }
 0x49b   :  { %v922_v41 = vpop.f32.mrf.mxu3  ;;  %1217 = vmatpush.msra.mxu3 %v2463_v30  ;;  %1181 = vmatpush.msra.mxu2 %v2494_v39 }
 0x49c   :  { %v2387_v45 = vadd.f32 %v922_v41, %v860_v40  ;;  %v2499_v40 = vld [vmem:[%s2668_s7 + $0x40] sm:$0xff]  ;;  %v2506_v41 = vld [vmem:[%s2667_s6 + $0x38] sm:$0xff] }
 0x49d   :  { %v991_v46 = vpop.f32.mrf.mxu1  ;;  %1218 = vmatpush.msra.mxu3 %v2475_v36  ;;  %1182 = vmatpush.msra.mxu2 %v2506_v41 }
 0x49e   :  { %v936_v50 = vmul.f32 %v2387_v45, %v2387_v45  ;;  %v927_v52 = vadd.f32 %v2387_v45, %v2389_v49  ;;  %v1015_v18 = vadd.f32 %v1014_v6, %v991_v46  ;;  %v2518_v46 = vld [vmem:[%s2667_s6 + $0x30] sm:$0xff] }
 0x49f   :  { %1219 = vmatpush.msra.mxu3 %v2487_v38  ;;  %v2523_v6 = vld [vmem:[%s2668_s7 + $0x30] sm:$0xff]  ;;  %1183 = vmatpush.msra.mxu2 %v2518_v46 }
 0x4a0   :  { %v937_v10 = vadd.f32 %v936_v50, %v935_v51  ;;  %v928_v13 = vrot.slane %v927_v52, 4  ;;  %v2530_v50 = vld [vmem:[%s2667_s6 + $0x28] sm:$0xff] }
 0x4a1   :  { %1220 = vmatpush.msra.mxu3 %v2499_v40  ;;  %v2535_v51 = vld [vmem:[%s2668_s7 + $0x28] sm:$0xff]  ;;  %1184 = vmatpush.msra.mxu2 %v2530_v50 }
 0x4a2   :  { %v938_v17 = vrot.slane %v937_v10, 4  ;;  %v929_v20 = vadd.f32 %v928_v13, %v927_v52  ;;  %v2542_v52 = vld [vmem:[%s2667_s6 + $0x20] sm:$0xff]  ;;  %v2559_v13 = vld [vmem:[%s2668_s7 + $0x18] sm:$0xff] }
 0x4a3   :  { %v1060_v53 = vpop.f32.mrf.mxu3  ;;  %1221 = vmatpush.msra.mxu3 %v2511_v42  ;;  %1185 = vmatpush.msra.mxu2 %v2542_v52 }
 0x4a4   :  { %v2397_v15 = vadd.f32 %v1060_v53, %v1015_v18  ;;  %v939_v7 = vadd.f32 %v938_v17, %v937_v10  ;;  %v930_v44 = vrot.slane %v929_v20, 2  ;;  %v2547_v53 = vld [vmem:[%s2668_s7 + $0x20] sm:$0xff]  ;;  %v2554_v10 = vld [vmem:[%s2667_s6 + $0x18] sm:$0xff]  ;;  %v2571_v18 = vld [vmem:[%s2668_s7 + $0x10] sm:$0xff] }
 0x4a5   :  { %v994_v14 = vpop.f32.mrf.mxu1  ;;  %1222 = vmatpush.msra.mxu3 %v2523_v6  ;;  %1186 = vmatpush.msra.mxu2 %v2554_v10 }
 0x4a6   :  { %v1018_v11 = vadd.f32 %v1017_v19, %v994_v14  ;;  %v1076_v57 = vmul.f32 %v2397_v15, %v2397_v15  ;;  %v940_v60 = vrot.slane %v939_v7, 2  ;;  %v931_v48 = vadd.f32 %v930_v44, %v929_v20  ;;  %v2564_v14 = vld [vmem:[%s2667_s6 + $0x10] sm:$0xff]  ;;  %v2576_v20 = vld [vmem:[%s2667_s6 + $0x8] sm:$0xff] }
 0x4a7   :  { %1223 = vmatpush.msra.mxu3 %v2535_v51  ;;  %1187 = vmatpush.msra.mxu2 %v2564_v14 }
 0x4a8   :  { %v941_v0 = vadd.f32 %v940_v60, %v939_v7  ;;  %v932_v3 = vrot.slane %v931_v48, 1 }
 0x4a9   :  { %1224 = vmatpush.msra.mxu3 %v2547_v53  ;;  %1188 = vmatpush.msra.mxu2 %v2576_v20 }
 0x4aa   :  { %v942_v8 = vrot.slane %v941_v0, 1  ;;  %v933_v22 = vadd.f32 %v932_v3, %v931_v48 }
 0x4ab   :  { %v1063_v2 = vpop.f32.mrf.mxu3  ;;  %1225 = vmatpush.msra.mxu3 %v2559_v13 }
 0x4ac   :  { %v2399_v56 = vadd.f32 %v1063_v2, %v1018_v11  ;;  %v943_v24 = vadd.f32 %v942_v8, %v941_v0  ;;  %v2581_v11 = vld [vmem:[%s2668_s7 + $0x8] sm:$0xff]  ;;  %v1086_v0 = vld [vmem:[%s2669_s12] sm:$0x1] }
 0x4ad   :  { %1226 = vmatpush.msra.mxu3 %v2571_v18 }
 0x4ae   :  { %v1068_v58 = vadd.f32 %v2399_v56, %v2397_v15  ;;  %v1077_v59 = vmul.f32 %v2399_v56, %v2399_v56 }
 0x4af   :  { %1227 = vmatpush.msra.mxu3 %v2581_v11 }
 0x4b0   :  { %v1069_v43 = vrot.slane %v1068_v58, 4  ;;  %v1078_v61 = vadd.f32 %v1077_v59, %v1076_v57  ;;  %v2588_v57 = vld [vmem:[%s2667_s6] sm:$0xff] }
 0x4b1   :  { %1189 = vmatpush.msra.mxu2 %v2588_v57 }
 0x4b2   :  { %v1070_v62 = vadd.f32 %v1069_v43, %v1068_v58  ;;  %v1079_v63 = vrot.slane %v1078_v61, 4  ;;  %v2593_v58 = vld [vmem:[%s2668_s7] sm:$0xff] }
 0x4b3   :  { %1228 = vmatpush.msra.mxu3 %v2593_v58 }
 0x4b4   :  { %v1071_v1 = vrot.slane %v1070_v62, 2  ;;  %v1080_v47 = vadd.f32 %v1079_v63, %v1078_v61 }
 0x4b6   :  { %v1072_v4 = vadd.f32 %v1071_v1, %v1070_v62  ;;  %v1081_v5 = vrot.slane %v1080_v47, 2 }
 0x4b8   :  { %v1073_v9 = vrot.slane %v1072_v4, 1  ;;  %v1082_v21 = vadd.f32 %v1081_v5, %v1080_v47 }
 0x4ba   :  { %v1074_v12 = vadd.f32 %v1073_v9, %v1072_v4  ;;  %v1083_v23 = vrot.slane %v1082_v21, 1  ;;  %v1087_v4 = vld [vmem:[%s2670_s13] sm:$0x1] }
 0x4bc   :  { %v1075_v16 = vadd.f32 %v1074_v12, %v933_v22  ;;  %v1084_v25 = vadd.f32 %v1083_v23, %v1082_v21 }
 0x4be   :  { %1104 = vmatmul.f32.vlgmr.msra.gmra.mxu0 %v1075_v16  ;;  %v1085_v26 = vadd.f32 %v1084_v25, %v943_v24 }
 0x4c0   :  { %1124 = vmatmul.f32.vlgmr.msrb.gmra.mxu1 %v1085_v26 }
 0x53b   :  { %v1105_v17 = vpop.f32.mrf.mxu0 }
 0x53c   :  { %v1128_v19 = vmul.f32 0.001953125, %v1105_v17 }
 0x53d   :  { %v1125_v2 = vpop.f32.mrf.mxu1 }
 0x53e   :  { %v1130_v7 = vmul.f32 %v1128_v19, %v1128_v19  ;;  %v1129_v44 = vmul.f32 0.001953125, %v1125_v2 }
 0x540   :  { %v1131_v59 = vsub.f32 %v1129_v44, %v1130_v7 }
 0x542   :  { %v1132_v60 = vadd.f32 1e-05, %v1131_v59 }
 0x544   :  { %1552 = vrsqrt.f32 %v1132_v60  ;;  %vm1139_vm6 = vweird.f32 %v1132_v60 }
 0x54a   :  { %v1553_v43 = vpop.eup %1552 }
 0x54b   :  { %v1134_v61 = vmul.f32 %v1553_v43, %v1132_v60  ;;  %vm1140_vm5 = vweird.f32 %v1553_v43 }
 0x54c   :  { %vm1141_vm7 = vmor %vm1139_vm6, %vm1140_vm5 }
 0x54d   :  { %v1135_v48 = vmul.f32 %v1553_v43, %v1134_v61 }
 0x54f   :  { %v1136_v62 = vmul.f32 0.5, %v1135_v48 }
 0x551   :  { %v1137_v63 = vsub.f32 1.5, %v1136_v62 }
 0x553   :  { %v1138_v1 = vmul.f32 %v1553_v43, %v1137_v63 }
 0x555   :  { %v1142_v47 = vsel %vm1141_vm7, %v1553_v43, %v1138_v1 }
 0x556   :  { %v1143_v3 = vmul.f32 %v1142_v47, %v1086_v0 }
 0x558   :  { %v1144_v5 = vmul.f32 %v1143_v3, %v1128_v19  ;;  %v1147_v9 = vperm.slane %v1143_v3, 0 }
 0x55a   :  { %v1145_v21 = vsub.f32 %v1087_v4, %v1144_v5  ;;  %v1149_v8 = vmul.f32 %v1147_v9, %v2389_v49  ;;  %v1288_v12 = vmul.f32 %v1147_v9, %v2397_v15  ;;  %v1289_v23 = vmul.f32 %v1147_v9, %v2399_v56  ;;  %v1238_v56 = vld [vmem:[%s2671_s8] sm:$0xff] }
 0x55b   :  { %v1150_v17 = vmul.f32 %v1147_v9, %v2387_v45  ;;  %v1262_v45 = vld [vmem:[%s2672_s9] sm:$0xff] }
 0x55c   :  { %v1152_v22 = vperm.slane %v1145_v21, 0 }
 0x55e   :  { %v1154_v16 = vadd.f32 %v1152_v22, %v1149_v8  ;;  %v1290_v24 = vadd.f32 %v1288_v12, %v1152_v22  ;;  %v1291_v25 = vadd.f32 %v1289_v23, %v1152_v22  ;;  %v1155_v2 = vadd.f32 %v1152_v22, %v1150_v17 }
 0x560   :  { %v1156_v26 = vmax.f32 %v1154_v16, 0.0  ;;  %v1157_v7 = vmax.f32 %v1155_v2, 0.0 }
 0x562   :  { %1190 = vmatmul.f32.vlgmr.msra.gmra.mxu2 %v1156_v26  ;;  %1229 = vmatmul.f32.vlgmr.msra.gmra.mxu3 %v1156_v26 }
 0x56a   :  { %1193 = vmatmul.f32.gmra.mxu2 %v1157_v7  ;;  %1232 = vmatmul.f32.gmra.mxu3 %v1157_v7 }
 0x5e5   :  { %v1191_v19 = vpop.f32.mrf.mxu2  ;;  %v1230_v44 = vpop.f32.mrf.mxu3 }
 0x5e6   :  { %v1236_v15 = vmax.f32 %v1191_v19, %v1230_v44 }
 0x5ed   :  { %v1194_v49 = vpop.f32.mrf.mxu2  ;;  %v1233_v59 = vpop.f32.mrf.mxu3 }
 0x5ee   :  { %v1237_v60 = vmax.f32 %v1194_v49, %v1233_v59 }
 0x5f0   :  { %1256 = vmatpush.msrb.mxu0 %v1237_v60  ;;  %1280 = vmatpush.msra.mxu1 %v1237_v60 }
 0x5f2   :  { %1257 = vmatpush.msrb.mxu0 %v1236_v15  ;;  %1281 = vmatpush.msra.mxu1 %v1236_v15 }
 0x5f3   :  { %1543 = vmatmul.msk.f32.vlgmr.msrb.gmra.mxu0 %vm57_vm0, %v1238_v56  ;;  %1544 = vmatmul.msk.f32.vlgmr.msra.gmra.mxu1 %vm57_vm0, %v1262_v45 }
 0x5f4   :  { %1310 = vmatpush.msra.mxu0 %v2410_v27  ;;  %1349 = vmatpush.msrb.mxu1 %v2415_v28  ;;  %v1292_v27 = vmax.f32 %v1290_v24, 0.0  ;;  %v1293_v28 = vmax.f32 %v1291_v25, 0.0 }
 0x5f6   :  { %1311 = vmatpush.msra.mxu0 %v2422_v29  ;;  %1350 = vmatpush.msrb.mxu1 %v2427_v31 }
 0x5f8   :  { %1312 = vmatpush.msra.mxu0 %v2434_v32  ;;  %1351 = vmatpush.msrb.mxu1 %v2439_v33 }
 0x5fa   :  { %1313 = vmatpush.msra.mxu0 %v2446_v34  ;;  %1352 = vmatpush.msrb.mxu1 %v2451_v54 }
 0x5fc   :  { %1314 = vmatpush.msra.mxu0 %v2458_v55  ;;  %1353 = vmatpush.msrb.mxu1 %v2463_v30 }
 0x5fe   :  { %1315 = vmatpush.msra.mxu0 %v2470_v35  ;;  %1354 = vmatpush.msrb.mxu1 %v2475_v36 }
 0x600   :  { %1316 = vmatpush.msra.mxu0 %v2482_v37  ;;  %1355 = vmatpush.msrb.mxu1 %v2487_v38 }
 0x602   :  { %1317 = vmatpush.msra.mxu0 %v2494_v39  ;;  %1356 = vmatpush.msrb.mxu1 %v2499_v40 }
 0x604   :  { %1318 = vmatpush.msra.mxu0 %v2506_v41  ;;  %1357 = vmatpush.msrb.mxu1 %v2511_v42 }
 0x606   :  { %1319 = vmatpush.msra.mxu0 %v2518_v46  ;;  %1358 = vmatpush.msrb.mxu1 %v2523_v6 }
 0x608   :  { %1320 = vmatpush.msra.mxu0 %v2530_v50  ;;  %1359 = vmatpush.msrb.mxu1 %v2535_v51 }
 0x60a   :  { %1321 = vmatpush.msra.mxu0 %v2542_v52  ;;  %1360 = vmatpush.msrb.mxu1 %v2547_v53 }
 0x60c   :  { %1322 = vmatpush.msra.mxu0 %v2554_v10  ;;  %1361 = vmatpush.msrb.mxu1 %v2559_v13 }
 0x60e   :  { %1323 = vmatpush.msra.mxu0 %v2564_v14  ;;  %1362 = vmatpush.msrb.mxu1 %v2571_v18 }
 0x610   :  { %1324 = vmatpush.msra.mxu0 %v2576_v20  ;;  %1363 = vmatpush.msrb.mxu1 %v2581_v11 }
 0x612   :  { %1325 = vmatpush.msra.mxu0 %v2588_v57  ;;  %1364 = vmatpush.msrb.mxu1 %v2593_v58 }
 0x613   :  { %1326 = vmatmul.f32.vlgmr.msra.gmra.mxu0 %v1292_v27  ;;  %1365 = vmatmul.f32.vlgmr.msrb.gmra.mxu1 %v1292_v27 }
 0x61b   :  { %1329 = vmatmul.f32.gmra.mxu0 %v1293_v28  ;;  %1368 = vmatmul.f32.gmra.mxu1 %v1293_v28 }
 0x670   :  { %v1259_v29 = vpop.f32.mrf.mxu0  ;;  %v1283_v31 = vpop.f32.mrf.mxu1 }
 0x671   :  { %v1286_v32 = vmax.f32 %v1259_v29, %v1283_v31 }
 0x673   :  { %1287 = vst.msk [vmem:[%s2673_s14] sm:$0xff] %vm238_vm1, %v1286_v32 }
 0x690   :  { %v1327_v33 = vpop.f32.mrf.mxu0  ;;  %v1366_v34 = vpop.f32.mrf.mxu1 }
 0x691   :  { %v1372_v35 = vmax.f32 %v1327_v33, %v1366_v34 }
 0x698   :  { %v1330_v54 = vpop.f32.mrf.mxu0  ;;  %v1369_v55 = vpop.f32.mrf.mxu1 }
 0x699   :  { %v1373_v30 = vmax.f32 %v1330_v54, %v1369_v55 }
 0x69b   :  { %1392 = vmatpush.msrb.mxu2 %v1373_v30 }
 0x69d   :  { %1393 = vmatpush.msrb.mxu2 %v1372_v35 }
 0x69e   :  { %1545 = vmatmul.msk.f32.vlgmr.msrb.gmra.mxu2 %vm57_vm0, %v1238_v56 }
 0x69f   :  { %1416 = vmatpush.msra.mxu2 %v1373_v30 }
 0x6a1   :  { %1417 = vmatpush.msra.mxu2 %v1372_v35 }
 0x6a6   :  { %1546 = vmatmul.msk.f32.vlgmr.msra.gmra.mxu2 %vm57_vm0, %v1262_v45 }
 0x721   :  { %v1395_v36 = vpop.f32.mrf.mxu2 }
 0x729   :  { %v1419_v37 = vpop.f32.mrf.mxu2 }
 0x72a   :  { %v1422_v38 = vmax.f32 %v1395_v36, %v1419_v37 }
 0x72c   :  { %1547 = vst.msk [vmem:[%s2673_s14 + $0x8] sm:$0xff] %vm238_vm1, %v1422_v38 }

</bundles_post_ra>
